<compile_context>
chip_gen: v5e
topology: v5e:2x2
jax: 0.10.0
libtpu: 0.0.40
codegen_flags: <defaults>
</compile_context>

<pallas_src>
import jax
import jax.numpy as jnp
from jax import lax
from jax.experimental import pallas as pl
from jax.experimental.pallas import tpu as pltpu

H = 128  # LSTM hidden size (fixed by the module)


def _velocity_kernel(x_ref, embed_ref,
                     wih_ref, whh_ref,
                     w1h_ref, w1e_ref, w2_ref,
                     misc_ref,
                     out_ref,
                     gx_ref):
    """Single-invocation kernel: LSTM recurrence + MLP head, all in VMEM.

    x_ref:    (T*Bp, D)  f32      embed_ref: (Bp, E) f32
    wih_ref:  (D, 4H)    f32      whh_ref:   (H, 4H) f32   (gate cols [i|f|o|g])
    w1h_ref:  (H, 128)   f32      w1e_ref:   (E, 128) f32  w2_ref: (128,128) f32
    misc_ref: (2, 4H)    f32      row0 = combined LSTM bias (reordered)
                                  row1 = [fc1_b | fc2_b | fc3_w | fc3_b bcast]
    out_ref:  (Bp, 2*H)  f32      [:, :H] = h_last, [:, H:] = y broadcast
    gx_ref:   (T, Bp, 4H) f32     hoisted x @ W_ih + bias
    """
    T, B, G = gx_ref.shape  # G == 4H

    # ---- Hoisted input projection: ONE MXU matmul + combined bias. ----
    b_lstm = misc_ref[0:1, :]                                   # (1, 4H)
    gx = jnp.dot(x_ref[...], wih_ref[...],
                 preferred_element_type=jnp.float32) + b_lstm   # (T*Bp, 4H)
    gx_ref[...] = gx.reshape(T, B, G)                           # free split of the sublane dim

    # ---- Recurrence: fully unrolled (T static); h/c stay f32 in vregs. ----
    h = jnp.zeros((B, H), jnp.float32)
    c = jnp.zeros((B, H), jnp.float32)
    for t in range(T):
        # gx_ref[t] is a leading-axis (sublane-aligned) load of (Bp, 4H).
        gates = gx_ref[t] + jnp.dot(h, whh_ref[...],
                                    preferred_element_type=jnp.float32)
        # Gate layout [i | f | o | g]: one contiguous sigmoid slice, one tanh.
        # sigmoid(x) = 0.5 * tanh(0.5 * x) + 0.5  (single EUP tanh, no exp/div).
        sig = 0.5 * jnp.tanh(0.5 * gates[:, :3 * H]) + 0.5
        i_g = sig[:, 0 * H:1 * H]
        f_g = sig[:, 1 * H:2 * H]
        o_g = sig[:, 2 * H:3 * H]
        g_g = jnp.tanh(gates[:, 3 * H:])
        c = f_g * c + i_g * g_g
        h = o_g * jnp.tanh(c)

    out_ref[:, :H] = h                                          # lane-dense store

    # ---- MLP head.  cat([h, embed]) @ W1 as a split matmul (lane-aligned). ----
    b1 = misc_ref[1:2, 0:128]
    b2 = misc_ref[1:2, 128:256]
    w3 = misc_ref[1:2, 256:384]
    b3 = misc_ref[1:2, 384:512]     # fc3 bias, pre-broadcast across 128 lanes
    a1 = jnp.maximum(
        jnp.dot(h, w1h_ref[...], preferred_element_type=jnp.float32)
        + jnp.dot(embed_ref[...], w1e_ref[...], preferred_element_type=jnp.float32)
        + b1, 0.0)
    a2 = jnp.maximum(
        jnp.dot(a1, w2_ref[...], preferred_element_type=jnp.float32) + b2, 0.0)
    # Final 128 -> 1 projection on the VPU/XLU (mul + lane reduce), stored
    # lane-dense (broadcast to 128 cols); the wrapper slices column 0.
    y = jnp.sum(a2 * w3, axis=-1, keepdims=True)                # (Bp, 1)
    out_ref[:, H:] = jnp.broadcast_to(y, (B, 128)) + b3


def velocity_predictor_forward(x, embed, params):
    """x: (T, B, D) f32, embed: (B, E) f32. Returns (h_last (B,H), y (B,1))."""
    T, B, D = x.shape
    E = embed.shape[1]
    assert D == H, "module is only consistent when input_dim == 128"

    f32 = jnp.float32
    Bp = max(8, ((B + 7) // 8) * 8)      # pad batch to a sublane multiple (free)

    # --- pad batch ---
    x_p = jnp.zeros((T, Bp, D), f32).at[:, :B, :].set(x.astype(f32))
    x2d = x_p.reshape(T * Bp, D)
    emb_p = jnp.zeros((Bp, E), f32).at[:B, :].set(embed.astype(f32))

    # --- reorder LSTM gates from PyTorch [i, f, g, o] to [i, f, o, g] ---
    def reorder(w):
        i, f, g, o = jnp.split(w, 4, axis=0)
        return jnp.concatenate([i, f, o, g], axis=0)

    wih_t = reorder(params["w_ih"]).T.astype(f32)        # (D, 4H)
    whh_t = reorder(params["w_hh"]).T.astype(f32)        # (H, 4H)
    b_lstm = reorder(params["b_ih"] + params["b_hh"])    # (4H,)

    w1_t = params["fc1_w"].T.astype(f32)                 # (H+E, 128)
    w1h = w1_t[:H, :]                                    # (H, 128)
    w1e = w1_t[H:, :]                                    # (E, 128)
    w2_t = params["fc2_w"].T.astype(f32)                 # (128, 128)

    # --- pack the five tiny f32 tensors into one buffer -> one DMA ---
    misc = jnp.zeros((2, 4 * H), f32)
    misc = misc.at[0, :].set(b_lstm)
    misc = misc.at[1, 0:128].set(params["fc1_b"])
    misc = misc.at[1, 128:256].set(params["fc2_b"])
    misc = misc.at[1, 256:384].set(params["fc3_w"].reshape(128))
    misc = misc.at[1, 384:512].set(jnp.full((128,), params["fc3_b"][0], f32))

    vmem = pl.BlockSpec(memory_space=pltpu.MemorySpace.VMEM)

    out = pl.pallas_call(
        _velocity_kernel,
        out_shape=jax.ShapeDtypeStruct((Bp, 2 * H), f32),
        in_specs=[vmem] * 8,
        out_specs=vmem,
        scratch_shapes=[pltpu.VMEM((T, Bp, 4 * H), jnp.float32)],  # hoisted gates_x
    )(x2d, emb_p, wih_t, whh_t, w1h, w1e, w2_t, misc)

    h_last = out[:B, :H]
    y = out[:B, H:H + 1]
    return h_last, y


def _reference_forward(x, embed, params):
    """Pure-JAX f32 reference mirroring torch.nn.LSTM + the fc head."""
    hi = lax.Precision.HIGHEST

    def cell(carry, x_t):
        h, c = carry
        gates = (jnp.dot(x_t, params["w_ih"].T, precision=hi) + params["b_ih"]
                 + jnp.dot(h, params["w_hh"].T, precision=hi) + params["b_hh"])
        i, f, g, o = jnp.split(gates, 4, axis=1)
        c = jax.nn.sigmoid(f) * c + jax.nn.sigmoid(i) * jnp.tanh(g)
        h = jax.nn.sigmoid(o) * jnp.tanh(c)
        return (h, c), h

    B = x.shape[1]
    h0 = jnp.zeros((B, H), jnp.float32)
    (h_last, _), _ = lax.scan(cell, (h0, h0), x)
    feat = jnp.concatenate([h_last, embed], axis=1)
    a1 = jnp.maximum(jnp.dot(feat, params["fc1_w"].T, precision=hi) + params["fc1_b"], 0.0)
    a2 = jnp.maximum(jnp.dot(a1, params["fc2_w"].T, precision=hi) + params["fc2_b"], 0.0)
    y = jnp.dot(a2, params["fc3_w"].T, precision=hi) + params["fc3_b"]
    return h_last, y


def init_params(key, input_dim, embed_dim):
    ks = jax.random.split(key, 10)
    s = 0.05
    return {
        "w_ih": s * jax.random.normal(ks[0], (4 * H, input_dim), jnp.float32),
        "w_hh": s * jax.random.normal(ks[1], (4 * H, H), jnp.float32),
        "b_ih": s * jax.random.normal(ks[2], (4 * H,), jnp.float32),
        "b_hh": s * jax.random.normal(ks[3], (4 * H,), jnp.float32),
        "fc1_w": s * jax.random.normal(ks[4], (128, input_dim + embed_dim), jnp.float32),
        "fc1_b": s * jax.random.normal(ks[5], (128,), jnp.float32),
        "fc2_w": s * jax.random.normal(ks[6], (128, 128), jnp.float32),
        "fc2_b": s * jax.random.normal(ks[7], (128,), jnp.float32),
        "fc3_w": s * jax.random.normal(ks[8], (1, 128), jnp.float32),
        "fc3_b": s * jax.random.normal(ks[9], (1,), jnp.float32),
    }


if __name__ == "__main__":
    key = jax.random.PRNGKey(0)
    k_x, k_e, k_p = jax.random.split(key, 3)

    seq, batch = 8, 2
    input_dim, embed_dim = 128, 32   # input_dim must equal 128 (see note above)

    x = jax.random.normal(k_x, (seq, batch, input_dim), jnp.float32)
    embed = jax.random.normal(k_e, (batch, embed_dim), jnp.float32)
    params = init_params(k_p, input_dim, embed_dim)

    h_last, y = velocity_predictor_forward(x, embed, params)
    jax.block_until_ready((h_last, y))

    h_ref, y_ref = _reference_forward(x, embed, params)
    assert h_last.shape == (batch, H) and y.shape == (batch, 1)
    # Kernel is f32 end-to-end now; atol-dominant comparison per the review.
    assert jnp.allclose(h_last, h_ref, atol=1e-2, rtol=1e-3)
    assert jnp.allclose(y, y_ref, atol=1e-2, rtol=1e-3)

    print("KERNEL_OK")
</pallas_src>

<mosaic_0001>
module attributes {stable_mosaic.version = 11 : i64} {
  func.func @_velocity_kernel(%arg0: memref<64x128xf32, #tpu.memory_space<vmem>>, %arg1: memref<8x32xf32, #tpu.memory_space<vmem>>, %arg2: memref<128x512xf32, #tpu.memory_space<vmem>>, %arg3: memref<128x512xf32, #tpu.memory_space<vmem>>, %arg4: memref<128x128xf32, #tpu.memory_space<vmem>>, %arg5: memref<32x128xf32, #tpu.memory_space<vmem>>, %arg6: memref<128x128xf32, #tpu.memory_space<vmem>>, %arg7: memref<2x512xf32, #tpu.memory_space<vmem>>, %arg8: memref<8x256xf32, #tpu.memory_space<vmem>>, %arg9: memref<8x8x512xf32, #tpu.memory_space<vmem>>) attributes {dimension_semantics = [], scalar_prefetch = 0 : i64, scratch_operands = 1 : i64, tpu.core_type = #tpu.core_type<tc>} {
    %c0 = arith.constant 0 : index
    %c0_0 = arith.constant 0 : index
    %0 = vector.load %arg7[%c0, %c0_0] : memref<2x512xf32, #tpu.memory_space<vmem>>, vector<1x512xf32>
    %c0_1 = arith.constant 0 : index
    %c0_2 = arith.constant 0 : index
    %1 = vector.load %arg0[%c0_1, %c0_2] : memref<64x128xf32, #tpu.memory_space<vmem>>, vector<64x128xf32>
    %c0_3 = arith.constant 0 : index
    %c0_4 = arith.constant 0 : index
    %2 = vector.load %arg2[%c0_3, %c0_4] : memref<128x512xf32, #tpu.memory_space<vmem>>, vector<128x512xf32>
    %cst = arith.constant dense<0.000000e+00> : vector<64x512xf32>
    %3 = tpu.matmul %1, %2, %cst {dimension_numbers = #tpu.dot_dimension_numbers<[1], [0], [0], [1], [0, 0, 1, 1], [], []>} : vector<64x128xf32>, vector<128x512xf32>, vector<64x512xf32> -> vector<64x512xf32>
    %4 = vector.broadcast %0 : vector<1x512xf32> to vector<64x512xf32>
    %5 = arith.addf %3, %4 : vector<64x512xf32>
    %6 = vector.shape_cast %5 : vector<64x512xf32> to vector<8x8x512xf32>
    %c0_5 = arith.constant 0 : index
    %c0_6 = arith.constant 0 : index
    %c0_7 = arith.constant 0 : index
    %7 = vector.load %arg9[%c0_5, %c0_6, %c0_7] : memref<8x8x512xf32, #tpu.memory_space<vmem>>, vector<8x8x512xf32>
    tpu.vector_store %arg9[%c0_5, %c0_6, %c0_7], %6 {strides = array<i32>} : memref<8x8x512xf32, #tpu.memory_space<vmem>>, vector<8x8x512xf32>,
    %cst_8 = arith.constant 0.000000e+00 : f32
    %8 = vector.broadcast %cst_8 : f32 to vector<8x128xf32>
    %cst_9 = arith.constant 0.000000e+00 : f32
    %9 = vector.broadcast %cst_9 : f32 to vector<8x128xf32>
    %c0_10 = arith.constant 0 : index
    %c0_11 = arith.constant 0 : index
    %c0_12 = arith.constant 0 : index
    %10 = vector.load %arg9[%c0_10, %c0_11, %c0_12] : memref<8x8x512xf32, #tpu.memory_space<vmem>>, vector<1x8x512xf32>
    %11 = vector.shape_cast %10 : vector<1x8x512xf32> to vector<8x512xf32>
    %c0_13 = arith.constant 0 : index
    %c0_14 = arith.constant 0 : index
    %12 = vector.load %arg3[%c0_13, %c0_14] : memref<128x512xf32, #tpu.memory_space<vmem>>, vector<128x512xf32>
    %cst_15 = arith.constant dense<0.000000e+00> : vector<8x512xf32>
    %13 = tpu.matmul %8, %12, %cst_15 {dimension_numbers = #tpu.dot_dimension_numbers<[1], [0], [0], [1], [0, 0, 1, 1], [], []>} : vector<8x128xf32>, vector<128x512xf32>, vector<8x512xf32> -> vector<8x512xf32>
    %14 = arith.addf %11, %13 : vector<8x512xf32>
    %15 = vector.extract_strided_slice %14 {offsets = [0, 0], sizes = [8, 384], strides = [1, 1]} : vector<8x512xf32> to vector<8x384xf32>
    %cst_16 = arith.constant 5.000000e-01 : f32
    %16 = vector.broadcast %cst_16 : f32 to vector<8x384xf32>
    %17 = arith.mulf %16, %15 : vector<8x384xf32>
    %18 = math.tanh %17 : vector<8x384xf32>
    %cst_17 = arith.constant 5.000000e-01 : f32
    %19 = vector.broadcast %cst_17 : f32 to vector<8x384xf32>
    %20 = arith.mulf %19, %18 : vector<8x384xf32>
    %cst_18 = arith.constant 5.000000e-01 : f32
    %21 = vector.broadcast %cst_18 : f32 to vector<8x384xf32>
    %22 = arith.addf %20, %21 : vector<8x384xf32>
    %23 = vector.extract_strided_slice %22 {offsets = [0, 0], sizes = [8, 128], strides = [1, 1]} : vector<8x384xf32> to vector<8x128xf32>
    %24 = vector.extract_strided_slice %22 {offsets = [0, 128], sizes = [8, 128], strides = [1, 1]} : vector<8x384xf32> to vector<8x128xf32>
    %25 = vector.extract_strided_slice %22 {offsets = [0, 256], sizes = [8, 128], strides = [1, 1]} : vector<8x384xf32> to vector<8x128xf32>
    %26 = vector.extract_strided_slice %14 {offsets = [0, 384], sizes = [8, 128], strides = [1, 1]} : vector<8x512xf32> to vector<8x128xf32>
    %27 = math.tanh %26 : vector<8x128xf32>
    %28 = arith.mulf %24, %9 : vector<8x128xf32>
    %29 = arith.mulf %23, %27 : vector<8x128xf32>
    %30 = arith.addf %28, %29 : vector<8x128xf32>
    %31 = math.tanh %30 : vector<8x128xf32>
    %32 = arith.mulf %25, %31 : vector<8x128xf32>
    %c1 = arith.constant 1 : index
    %c0_19 = arith.constant 0 : index
    %c0_20 = arith.constant 0 : index
    %33 = vector.load %arg9[%c1, %c0_19, %c0_20] : memref<8x8x512xf32, #tpu.memory_space<vmem>>, vector<1x8x512xf32>
    %34 = vector.shape_cast %33 : vector<1x8x512xf32> to vector<8x512xf32>
    %c0_21 = arith.constant 0 : index
    %c0_22 = arith.constant 0 : index
    %35 = vector.load %arg3[%c0_21, %c0_22] : memref<128x512xf32, #tpu.memory_space<vmem>>, vector<128x512xf32>
    %cst_23 = arith.constant dense<0.000000e+00> : vector<8x512xf32>
    %36 = tpu.matmul %32, %35, %cst_23 {dimension_numbers = #tpu.dot_dimension_numbers<[1], [0], [0], [1], [0, 0, 1, 1], [], []>} : vector<8x128xf32>, vector<128x512xf32>, vector<8x512xf32> -> vector<8x512xf32>
    %37 = arith.addf %34, %36 : vector<8x512xf32>
    %38 = vector.extract_strided_slice %37 {offsets = [0, 0], sizes = [8, 384], strides = [1, 1]} : vector<8x512xf32> to vector<8x384xf32>
    %cst_24 = arith.constant 5.000000e-01 : f32
    %39 = vector.broadcast %cst_24 : f32 to vector<8x384xf32>
    %40 = arith.mulf %39, %38 : vector<8x384xf32>
    %41 = math.tanh %40 : vector<8x384xf32>
    %cst_25 = arith.constant 5.000000e-01 : f32
    %42 = vector.broadcast %cst_25 : f32 to vector<8x384xf32>
    %43 = arith.mulf %42, %41 : vector<8x384xf32>
    %cst_26 = arith.constant 5.000000e-01 : f32
    %44 = vector.broadcast %cst_26 : f32 to vector<8x384xf32>
    %45 = arith.addf %43, %44 : vector<8x384xf32>
    %46 = vector.extract_strided_slice %45 {offsets = [0, 0], sizes = [8, 128], strides = [1, 1]} : vector<8x384xf32> to vector<8x128xf32>
    %47 = vector.extract_strided_slice %45 {offsets = [0, 128], sizes = [8, 128], strides = [1, 1]} : vector<8x384xf32> to vector<8x128xf32>
    %48 = vector.extract_strided_slice %45 {offsets = [0, 256], sizes = [8, 128], strides = [1, 1]} : vector<8x384xf32> to vector<8x128xf32>
    %49 = vector.extract_strided_slice %37 {offsets = [0, 384], sizes = [8, 128], strides = [1, 1]} : vector<8x512xf32> to vector<8x128xf32>
    %50 = math.tanh %49 : vector<8x128xf32>
    %51 = arith.mulf %47, %30 : vector<8x128xf32>
    %52 = arith.mulf %46, %50 : vector<8x128xf32>
    %53 = arith.addf %51, %52 : vector<8x128xf32>
    %54 = math.tanh %53 : vector<8x128xf32>
    %55 = arith.mulf %48, %54 : vector<8x128xf32>
    %c2 = arith.constant 2 : index
    %c0_27 = arith.constant 0 : index
    %c0_28 = arith.constant 0 : index
    %56 = vector.load %arg9[%c2, %c0_27, %c0_28] : memref<8x8x512xf32, #tpu.memory_space<vmem>>, vector<1x8x512xf32>
    %57 = vector.shape_cast %56 : vector<1x8x512xf32> to vector<8x512xf32>
    %c0_29 = arith.constant 0 : index
    %c0_30 = arith.constant 0 : index
    %58 = vector.load %arg3[%c0_29, %c0_30] : memref<128x512xf32, #tpu.memory_space<vmem>>, vector<128x512xf32>
    %cst_31 = arith.constant dense<0.000000e+00> : vector<8x512xf32>
    %59 = tpu.matmul %55, %58, %cst_31 {dimension_numbers = #tpu.dot_dimension_numbers<[1], [0], [0], [1], [0, 0, 1, 1], [], []>} : vector<8x128xf32>, vector<128x512xf32>, vector<8x512xf32> -> vector<8x512xf32>
    %60 = arith.addf %57, %59 : vector<8x512xf32>
    %61 = vector.extract_strided_slice %60 {offsets = [0, 0], sizes = [8, 384], strides = [1, 1]} : vector<8x512xf32> to vector<8x384xf32>
    %cst_32 = arith.constant 5.000000e-01 : f32
    %62 = vector.broadcast %cst_32 : f32 to vector<8x384xf32>
    %63 = arith.mulf %62, %61 : vector<8x384xf32>
    %64 = math.tanh %63 : vector<8x384xf32>
    %cst_33 = arith.constant 5.000000e-01 : f32
    %65 = vector.broadcast %cst_33 : f32 to vector<8x384xf32>
    %66 = arith.mulf %65, %64 : vector<8x384xf32>
    %cst_34 = arith.constant 5.000000e-01 : f32
    %67 = vector.broadcast %cst_34 : f32 to vector<8x384xf32>
    %68 = arith.addf %66, %67 : vector<8x384xf32>
    %69 = vector.extract_strided_slice %68 {offsets = [0, 0], sizes = [8, 128], strides = [1, 1]} : vector<8x384xf32> to vector<8x128xf32>
    %70 = vector.extract_strided_slice %68 {offsets = [0, 128], sizes = [8, 128], strides = [1, 1]} : vector<8x384xf32> to vector<8x128xf32>
    %71 = vector.extract_strided_slice %68 {offsets = [0, 256], sizes = [8, 128], strides = [1, 1]} : vector<8x384xf32> to vector<8x128xf32>
    %72 = vector.extract_strided_slice %60 {offsets = [0, 384], sizes = [8, 128], strides = [1, 1]} : vector<8x512xf32> to vector<8x128xf32>
    %73 = math.tanh %72 : vector<8x128xf32>
    %74 = arith.mulf %70, %53 : vector<8x128xf32>
    %75 = arith.mulf %69, %73 : vector<8x128xf32>
    %76 = arith.addf %74, %75 : vector<8x128xf32>
    %77 = math.tanh %76 : vector<8x128xf32>
    %78 = arith.mulf %71, %77 : vector<8x128xf32>
    %c3 = arith.constant 3 : index
    %c0_35 = arith.constant 0 : index
    %c0_36 = arith.constant 0 : index
    %79 = vector.load %arg9[%c3, %c0_35, %c0_36] : memref<8x8x512xf32, #tpu.memory_space<vmem>>, vector<1x8x512xf32>
    %80 = vector.shape_cast %79 : vector<1x8x512xf32> to vector<8x512xf32>
    %c0_37 = arith.constant 0 : index
    %c0_38 = arith.constant 0 : index
    %81 = vector.load %arg3[%c0_37, %c0_38] : memref<128x512xf32, #tpu.memory_space<vmem>>, vector<128x512xf32>
    %cst_39 = arith.constant dense<0.000000e+00> : vector<8x512xf32>
    %82 = tpu.matmul %78, %81, %cst_39 {dimension_numbers = #tpu.dot_dimension_numbers<[1], [0], [0], [1], [0, 0, 1, 1], [], []>} : vector<8x128xf32>, vector<128x512xf32>, vector<8x512xf32> -> vector<8x512xf32>
    %83 = arith.addf %80, %82 : vector<8x512xf32>
    %84 = vector.extract_strided_slice %83 {offsets = [0, 0], sizes = [8, 384], strides = [1, 1]} : vector<8x512xf32> to vector<8x384xf32>
    %cst_40 = arith.constant 5.000000e-01 : f32
    %85 = vector.broadcast %cst_40 : f32 to vector<8x384xf32>
    %86 = arith.mulf %85, %84 : vector<8x384xf32>
    %87 = math.tanh %86 : vector<8x384xf32>
    %cst_41 = arith.constant 5.000000e-01 : f32
    %88 = vector.broadcast %cst_41 : f32 to vector<8x384xf32>
    %89 = arith.mulf %88, %87 : vector<8x384xf32>
    %cst_42 = arith.constant 5.000000e-01 : f32
    %90 = vector.broadcast %cst_42 : f32 to vector<8x384xf32>
    %91 = arith.addf %89, %90 : vector<8x384xf32>
    %92 = vector.extract_strided_slice %91 {offsets = [0, 0], sizes = [8, 128], strides = [1, 1]} : vector<8x384xf32> to vector<8x128xf32>
    %93 = vector.extract_strided_slice %91 {offsets = [0, 128], sizes = [8, 128], strides = [1, 1]} : vector<8x384xf32> to vector<8x128xf32>
    %94 = vector.extract_strided_slice %91 {offsets = [0, 256], sizes = [8, 128], strides = [1, 1]} : vector<8x384xf32> to vector<8x128xf32>
    %95 = vector.extract_strided_slice %83 {offsets = [0, 384], sizes = [8, 128], strides = [1, 1]} : vector<8x512xf32> to vector<8x128xf32>
    %96 = math.tanh %95 : vector<8x128xf32>
    %97 = arith.mulf %93, %76 : vector<8x128xf32>
    %98 = arith.mulf %92, %96 : vector<8x128xf32>
    %99 = arith.addf %97, %98 : vector<8x128xf32>
    %100 = math.tanh %99 : vector<8x128xf32>
    %101 = arith.mulf %94, %100 : vector<8x128xf32>
    %c4 = arith.constant 4 : index
    %c0_43 = arith.constant 0 : index
    %c0_44 = arith.constant 0 : index
    %102 = vector.load %arg9[%c4, %c0_43, %c0_44] : memref<8x8x512xf32, #tpu.memory_space<vmem>>, vector<1x8x512xf32>
    %103 = vector.shape_cast %102 : vector<1x8x512xf32> to vector<8x512xf32>
    %c0_45 = arith.constant 0 : index
    %c0_46 = arith.constant 0 : index
    %104 = vector.load %arg3[%c0_45, %c0_46] : memref<128x512xf32, #tpu.memory_space<vmem>>, vector<128x512xf32>
    %cst_47 = arith.constant dense<0.000000e+00> : vector<8x512xf32>
    %105 = tpu.matmul %101, %104, %cst_47 {dimension_numbers = #tpu.dot_dimension_numbers<[1], [0], [0], [1], [0, 0, 1, 1], [], []>} : vector<8x128xf32>, vector<128x512xf32>, vector<8x512xf32> -> vector<8x512xf32>
    %106 = arith.addf %103, %105 : vector<8x512xf32>
    %107 = vector.extract_strided_slice %106 {offsets = [0, 0], sizes = [8, 384], strides = [1, 1]} : vector<8x512xf32> to vector<8x384xf32>
    %cst_48 = arith.constant 5.000000e-01 : f32
    %108 = vector.broadcast %cst_48 : f32 to vector<8x384xf32>
    %109 = arith.mulf %108, %107 : vector<8x384xf32>
    %110 = math.tanh %109 : vector<8x384xf32>
    %cst_49 = arith.constant 5.000000e-01 : f32
    %111 = vector.broadcast %cst_49 : f32 to vector<8x384xf32>
    %112 = arith.mulf %111, %110 : vector<8x384xf32>
    %cst_50 = arith.constant 5.000000e-01 : f32
    %113 = vector.broadcast %cst_50 : f32 to vector<8x384xf32>
    %114 = arith.addf %112, %113 : vector<8x384xf32>
    %115 = vector.extract_strided_slice %114 {offsets = [0, 0], sizes = [8, 128], strides = [1, 1]} : vector<8x384xf32> to vector<8x128xf32>
    %116 = vector.extract_strided_slice %114 {offsets = [0, 128], sizes = [8, 128], strides = [1, 1]} : vector<8x384xf32> to vector<8x128xf32>
    %117 = vector.extract_strided_slice %114 {offsets = [0, 256], sizes = [8, 128], strides = [1, 1]} : vector<8x384xf32> to vector<8x128xf32>
    %118 = vector.extract_strided_slice %106 {offsets = [0, 384], sizes = [8, 128], strides = [1, 1]} : vector<8x512xf32> to vector<8x128xf32>
    %119 = math.tanh %118 : vector<8x128xf32>
    %120 = arith.mulf %116, %99 : vector<8x128xf32>
    %121 = arith.mulf %115, %119 : vector<8x128xf32>
    %122 = arith.addf %120, %121 : vector<8x128xf32>
    %123 = math.tanh %122 : vector<8x128xf32>
    %124 = arith.mulf %117, %123 : vector<8x128xf32>
    %c5 = arith.constant 5 : index
    %c0_51 = arith.constant 0 : index
    %c0_52 = arith.constant 0 : index
    %125 = vector.load %arg9[%c5, %c0_51, %c0_52] : memref<8x8x512xf32, #tpu.memory_space<vmem>>, vector<1x8x512xf32>
    %126 = vector.shape_cast %125 : vector<1x8x512xf32> to vector<8x512xf32>
    %c0_53 = arith.constant 0 : index
    %c0_54 = arith.constant 0 : index
    %127 = vector.load %arg3[%c0_53, %c0_54] : memref<128x512xf32, #tpu.memory_space<vmem>>, vector<128x512xf32>
    %cst_55 = arith.constant dense<0.000000e+00> : vector<8x512xf32>
    %128 = tpu.matmul %124, %127, %cst_55 {dimension_numbers = #tpu.dot_dimension_numbers<[1], [0], [0], [1], [0, 0, 1, 1], [], []>} : vector<8x128xf32>, vector<128x512xf32>, vector<8x512xf32> -> vector<8x512xf32>
    %129 = arith.addf %126, %128 : vector<8x512xf32>
    %130 = vector.extract_strided_slice %129 {offsets = [0, 0], sizes = [8, 384], strides = [1, 1]} : vector<8x512xf32> to vector<8x384xf32>
    %cst_56 = arith.constant 5.000000e-01 : f32
    %131 = vector.broadcast %cst_56 : f32 to vector<8x384xf32>
    %132 = arith.mulf %131, %130 : vector<8x384xf32>
    %133 = math.tanh %132 : vector<8x384xf32>
    %cst_57 = arith.constant 5.000000e-01 : f32
    %134 = vector.broadcast %cst_57 : f32 to vector<8x384xf32>
    %135 = arith.mulf %134, %133 : vector<8x384xf32>
    %cst_58 = arith.constant 5.000000e-01 : f32
    %136 = vector.broadcast %cst_58 : f32 to vector<8x384xf32>
    %137 = arith.addf %135, %136 : vector<8x384xf32>
    %138 = vector.extract_strided_slice %137 {offsets = [0, 0], sizes = [8, 128], strides = [1, 1]} : vector<8x384xf32> to vector<8x128xf32>
    %139 = vector.extract_strided_slice %137 {offsets = [0, 128], sizes = [8, 128], strides = [1, 1]} : vector<8x384xf32> to vector<8x128xf32>
    %140 = vector.extract_strided_slice %137 {offsets = [0, 256], sizes = [8, 128], strides = [1, 1]} : vector<8x384xf32> to vector<8x128xf32>
    %141 = vector.extract_strided_slice %129 {offsets = [0, 384], sizes = [8, 128], strides = [1, 1]} : vector<8x512xf32> to vector<8x128xf32>
    %142 = math.tanh %141 : vector<8x128xf32>
    %143 = arith.mulf %139, %122 : vector<8x128xf32>
    %144 = arith.mulf %138, %142 : vector<8x128xf32>
    %145 = arith.addf %143, %144 : vector<8x128xf32>
    %146 = math.tanh %145 : vector<8x128xf32>
    %147 = arith.mulf %140, %146 : vector<8x128xf32>
    %c6 = arith.constant 6 : index
    %c0_59 = arith.constant 0 : index
    %c0_60 = arith.constant 0 : index
    %148 = vector.load %arg9[%c6, %c0_59, %c0_60] : memref<8x8x512xf32, #tpu.memory_space<vmem>>, vector<1x8x512xf32>
    %149 = vector.shape_cast %148 : vector<1x8x512xf32> to vector<8x512xf32>
    %c0_61 = arith.constant 0 : index
    %c0_62 = arith.constant 0 : index
    %150 = vector.load %arg3[%c0_61, %c0_62] : memref<128x512xf32, #tpu.memory_space<vmem>>, vector<128x512xf32>
    %cst_63 = arith.constant dense<0.000000e+00> : vector<8x512xf32>
    %151 = tpu.matmul %147, %150, %cst_63 {dimension_numbers = #tpu.dot_dimension_numbers<[1], [0], [0], [1], [0, 0, 1, 1], [], []>} : vector<8x128xf32>, vector<128x512xf32>, vector<8x512xf32> -> vector<8x512xf32>
    %152 = arith.addf %149, %151 : vector<8x512xf32>
    %153 = vector.extract_strided_slice %152 {offsets = [0, 0], sizes = [8, 384], strides = [1, 1]} : vector<8x512xf32> to vector<8x384xf32>
    %cst_64 = arith.constant 5.000000e-01 : f32
    %154 = vector.broadcast %cst_64 : f32 to vector<8x384xf32>
    %155 = arith.mulf %154, %153 : vector<8x384xf32>
    %156 = math.tanh %155 : vector<8x384xf32>
    %cst_65 = arith.constant 5.000000e-01 : f32
    %157 = vector.broadcast %cst_65 : f32 to vector<8x384xf32>
    %158 = arith.mulf %157, %156 : vector<8x384xf32>
    %cst_66 = arith.constant 5.000000e-01 : f32
    %159 = vector.broadcast %cst_66 : f32 to vector<8x384xf32>
    %160 = arith.addf %158, %159 : vector<8x384xf32>
    %161 = vector.extract_strided_slice %160 {offsets = [0, 0], sizes = [8, 128], strides = [1, 1]} : vector<8x384xf32> to vector<8x128xf32>
    %162 = vector.extract_strided_slice %160 {offsets = [0, 128], sizes = [8, 128], strides = [1, 1]} : vector<8x384xf32> to vector<8x128xf32>
    %163 = vector.extract_strided_slice %160 {offsets = [0, 256], sizes = [8, 128], strides = [1, 1]} : vector<8x384xf32> to vector<8x128xf32>
    %164 = vector.extract_strided_slice %152 {offsets = [0, 384], sizes = [8, 128], strides = [1, 1]} : vector<8x512xf32> to vector<8x128xf32>
    %165 = math.tanh %164 : vector<8x128xf32>
    %166 = arith.mulf %162, %145 : vector<8x128xf32>
    %167 = arith.mulf %161, %165 : vector<8x128xf32>
    %168 = arith.addf %166, %167 : vector<8x128xf32>
    %169 = math.tanh %168 : vector<8x128xf32>
    %170 = arith.mulf %163, %169 : vector<8x128xf32>
    %c7 = arith.constant 7 : index
    %c0_67 = arith.constant 0 : index
    %c0_68 = arith.constant 0 : index
    %171 = vector.load %arg9[%c7, %c0_67, %c0_68] : memref<8x8x512xf32, #tpu.memory_space<vmem>>, vector<1x8x512xf32>
    %172 = vector.shape_cast %171 : vector<1x8x512xf32> to vector<8x512xf32>
    %c0_69 = arith.constant 0 : index
    %c0_70 = arith.constant 0 : index
    %173 = vector.load %arg3[%c0_69, %c0_70] : memref<128x512xf32, #tpu.memory_space<vmem>>, vector<128x512xf32>
    %cst_71 = arith.constant dense<0.000000e+00> : vector<8x512xf32>
    %174 = tpu.matmul %170, %173, %cst_71 {dimension_numbers = #tpu.dot_dimension_numbers<[1], [0], [0], [1], [0, 0, 1, 1], [], []>} : vector<8x128xf32>, vector<128x512xf32>, vector<8x512xf32> -> vector<8x512xf32>
    %175 = arith.addf %172, %174 : vector<8x512xf32>
    %176 = vector.extract_strided_slice %175 {offsets = [0, 0], sizes = [8, 384], strides = [1, 1]} : vector<8x512xf32> to vector<8x384xf32>
    %cst_72 = arith.constant 5.000000e-01 : f32
    %177 = vector.broadcast %cst_72 : f32 to vector<8x384xf32>
    %178 = arith.mulf %177, %176 : vector<8x384xf32>
    %179 = math.tanh %178 : vector<8x384xf32>
    %cst_73 = arith.constant 5.000000e-01 : f32
    %180 = vector.broadcast %cst_73 : f32 to vector<8x384xf32>
    %181 = arith.mulf %180, %179 : vector<8x384xf32>
    %cst_74 = arith.constant 5.000000e-01 : f32
    %182 = vector.broadcast %cst_74 : f32 to vector<8x384xf32>
    %183 = arith.addf %181, %182 : vector<8x384xf32>
    %184 = vector.extract_strided_slice %183 {offsets = [0, 0], sizes = [8, 128], strides = [1, 1]} : vector<8x384xf32> to vector<8x128xf32>
    %185 = vector.extract_strided_slice %183 {offsets = [0, 128], sizes = [8, 128], strides = [1, 1]} : vector<8x384xf32> to vector<8x128xf32>
    %186 = vector.extract_strided_slice %183 {offsets = [0, 256], sizes = [8, 128], strides = [1, 1]} : vector<8x384xf32> to vector<8x128xf32>
    %187 = vector.extract_strided_slice %175 {offsets = [0, 384], sizes = [8, 128], strides = [1, 1]} : vector<8x512xf32> to vector<8x128xf32>
    %188 = math.tanh %187 : vector<8x128xf32>
    %189 = arith.mulf %185, %168 : vector<8x128xf32>
    %190 = arith.mulf %184, %188 : vector<8x128xf32>
    %191 = arith.addf %189, %190 : vector<8x128xf32>
    %192 = math.tanh %191 : vector<8x128xf32>
    %193 = arith.mulf %186, %192 : vector<8x128xf32>
    %c0_75 = arith.constant 0 : index
    %c0_76 = arith.constant 0 : index
    %194 = vector.load %arg8[%c0_75, %c0_76] : memref<8x256xf32, #tpu.memory_space<vmem>>, vector<8x128xf32>
    tpu.vector_store %arg8[%c0_75, %c0_76], %193 {strides = array<i32>} : memref<8x256xf32, #tpu.memory_space<vmem>>, vector<8x128xf32>,
    %c1_77 = arith.constant 1 : index
    %c0_78 = arith.constant 0 : index
    %195 = vector.load %arg7[%c1_77, %c0_78] : memref<2x512xf32, #tpu.memory_space<vmem>>, vector<1x128xf32>
    %c1_79 = arith.constant 1 : index
    %c128 = arith.constant 128 : index
    %196 = vector.load %arg7[%c1_79, %c128] : memref<2x512xf32, #tpu.memory_space<vmem>>, vector<1x128xf32>
    %c1_80 = arith.constant 1 : index
    %c256 = arith.constant 256 : index
    %197 = vector.load %arg7[%c1_80, %c256] : memref<2x512xf32, #tpu.memory_space<vmem>>, vector<1x128xf32>
    %c1_81 = arith.constant 1 : index
    %c384 = arith.constant 384 : index
    %198 = vector.load %arg7[%c1_81, %c384] : memref<2x512xf32, #tpu.memory_space<vmem>>, vector<1x128xf32>
    %c0_82 = arith.constant 0 : index
    %c0_83 = arith.constant 0 : index
    %199 = vector.load %arg4[%c0_82, %c0_83] : memref<128x128xf32, #tpu.memory_space<vmem>>, vector<128x128xf32>
    %cst_84 = arith.constant dense<0.000000e+00> : vector<8x128xf32>
    %200 = tpu.matmul %193, %199, %cst_84 {dimension_numbers = #tpu.dot_dimension_numbers<[1], [0], [0], [1], [0, 0, 1, 1], [], []>} : vector<8x128xf32>, vector<128x128xf32>, vector<8x128xf32> -> vector<8x128xf32>
    %c0_85 = arith.constant 0 : index
    %c0_86 = arith.constant 0 : index
    %201 = vector.load %arg1[%c0_85, %c0_86] : memref<8x32xf32, #tpu.memory_space<vmem>>, vector<8x32xf32>
    %c0_87 = arith.constant 0 : index
    %c0_88 = arith.constant 0 : index
    %202 = vector.load %arg5[%c0_87, %c0_88] : memref<32x128xf32, #tpu.memory_space<vmem>>, vector<32x128xf32>
    %cst_89 = arith.constant dense<0.000000e+00> : vector<8x128xf32>
    %203 = tpu.matmul %201, %202, %cst_89 {dimension_numbers = #tpu.dot_dimension_numbers<[1], [0], [0], [1], [0, 0, 1, 1], [], []>} : vector<8x32xf32>, vector<32x128xf32>, vector<8x128xf32> -> vector<8x128xf32>
    %204 = arith.addf %200, %203 : vector<8x128xf32>
    %205 = vector.broadcast %195 : vector<1x128xf32> to vector<8x128xf32>
    %206 = arith.addf %204, %205 : vector<8x128xf32>
    %cst_90 = arith.constant 0.000000e+00 : f32
    %207 = vector.broadcast %cst_90 : f32 to vector<8x128xf32>
    %208 = arith.maximumf %206, %207 : vector<8x128xf32>
    %c0_91 = arith.constant 0 : index
    %c0_92 = arith.constant 0 : index
    %209 = vector.load %arg6[%c0_91, %c0_92] : memref<128x128xf32, #tpu.memory_space<vmem>>, vector<128x128xf32>
    %cst_93 = arith.constant dense<0.000000e+00> : vector<8x128xf32>
    %210 = tpu.matmul %208, %209, %cst_93 {dimension_numbers = #tpu.dot_dimension_numbers<[1], [0], [0], [1], [0, 0, 1, 1], [], []>} : vector<8x128xf32>, vector<128x128xf32>, vector<8x128xf32> -> vector<8x128xf32>
    %211 = vector.broadcast %196 : vector<1x128xf32> to vector<8x128xf32>
    %212 = arith.addf %210, %211 : vector<8x128xf32>
    %cst_94 = arith.constant 0.000000e+00 : f32
    %213 = vector.broadcast %cst_94 : f32 to vector<8x128xf32>
    %214 = arith.maximumf %212, %213 : vector<8x128xf32>
    %215 = vector.broadcast %197 : vector<1x128xf32> to vector<8x128xf32>
    %216 = arith.mulf %214, %215 : vector<8x128xf32>
    %cst_95 = arith.constant dense<0.000000e+00> : vector<8xf32>
    %217 = vector.multi_reduction <add>, %216, %cst_95 [1] : vector<8x128xf32> to vector<8xf32>
    %218 = vector.shape_cast %217 : vector<8xf32> to vector<8x1xf32>
    %219 = vector.shape_cast %218 : vector<8x1xf32> to vector<8x1xf32>
    %220 = vector.broadcast %219 : vector<8x1xf32> to vector<8x128xf32>
    %221 = vector.broadcast %198 : vector<1x128xf32> to vector<8x128xf32>
    %222 = arith.addf %220, %221 : vector<8x128xf32>
    %c0_96 = arith.constant 0 : index
    %c128_97 = arith.constant 128 : index
    %223 = vector.load %arg8[%c0_96, %c128_97] : memref<8x256xf32, #tpu.memory_space<vmem>>, vector<8x128xf32>
    tpu.vector_store %arg8[%c0_96, %c128_97], %222 {strides = array<i32>} : memref<8x256xf32, #tpu.memory_space<vmem>>, vector<8x128xf32>,
    return
  }
}

</mosaic_0001>

<bundles_post_ra>
// kernel: tpu_custom_call.1
= control target key start
LH: loop header
LB: loop body
LE: loop exit
PB: predicated region body
PF: predicated region fallthrough
CT: control target
= control target key end

     0   :  { %13 = vsyncpa [#allocation4], 0  ;;  %s2878_s0 = inlined_call_operand.hbm [shape: f32[64,128], index: 0, kind: input, shape index: {}]   ;;  %s2879_s1 = inlined_call_operand.hbm [shape: f32[8,32], index: 1, kind: input, shape index: {}]   ;;  %s2880_s2 = inlined_call_operand.hbm [shape: f32[128,512], index: 2, kind: input, shape index: {}]   ;;  %s2881_s3 = inlined_call_operand.hbm [shape: f32[128,512], index: 3, kind: input, shape index: {}]   ;;  %s2882_s4 = inlined_call_operand.hbm [shape: f32[128,128], index: 4, kind: input, shape index: {}]   ;;  %s2883_s5 = inlined_call_operand.hbm [shape: f32[32,128], index: 5, kind: input, shape index: {}]   ;;  %s2884_s6 = inlined_call_operand.hbm [shape: f32[128,128], index: 6, kind: input, shape index: {}]   ;;  %s2885_s7 = inlined_call_operand.hbm [shape: f32[2,512], index: 7, kind: input, shape index: {}]   ;;  %s2886_s8 = inlined_call_operand.hbm [shape: f32[8,256], index: 8, kind: output, shape index: {}]  }
   0x1   :  { %14 = vsyncpa [#allocation7], 0 }
   0x2   :  { %15 = vsyncpa [#allocation10], 0 }
   0x3   :  { %16 = vsyncpa [#allocation13], 0 }
   0x4   :  { %17 = vsyncpa [#allocation16], 0  ;;  %s37_s29 = sshll.u32 %s2879_s1, 4  ;;  %s38_s29 = int_to_ptr.hbm [resolvable:$true] %s37_s29 }
   0x5   :  { %18 = vsyncpa [#allocation5], 0  ;;  %s1878_s30 = smov [#allocation6]   ;;  %s60_s12 = sshll.u32 %s2881_s3, 4  ;;  %s61_s12 = int_to_ptr.hbm [resolvable:$true] %s60_s12 }
   0x6   :  { %s39_s9 = sshll.u32 %s1878_s30, 4  ;;  %s1879_s13 = smov [#allocation9]   ;;  %s40_s9 = int_to_ptr.vmem [resolvable:$true] %s39_s9 }
   0x7   :  { %42 = dma.hbm_to_vmem [thread:$0]  %s38_s29, 128, %s40_s9, [#allocation7]  }
   0x8   :  { %s62_s14 = sshll.u32 %s1879_s13, 4  ;;  %s1880_s15 = smov 512   ;;  %s63_s14 = int_to_ptr.vmem [resolvable:$true] %s62_s14 }
   0x9   :  { %s1881_s16 = smov 32   ;;  %s86_s1 = sshll.u32 %s2883_s5, 4  ;;  %s87_s1 = int_to_ptr.hbm [resolvable:$true] %s86_s1 }
   0xa   :  { %68 = dma.hbm_to_vmem [thread:$0]  %s61_s12, 8192, %s63_s14, [#allocation10], %s1880_s15, %s1880_s15, %s1881_s16  }
   0xb   :  { %s1882_s19 = smov [#allocation12]   ;;  %s23_s23 = sshll.u32 %s2878_s0, 4  ;;  %s24_s23 = int_to_ptr.hbm [resolvable:$true] %s23_s23 }
   0xc   :  { %s88_s20 = sshll.u32 %s1882_s19, 4  ;;  %s1883_s3 = smov 128   ;;  %s89_s20 = int_to_ptr.vmem [resolvable:$true] %s88_s20 }
   0xd   :  { %s1884_s24 = smov 8   ;;  %s1885_s25 = smov [#allocation3]  }
   0xe   :  { %94 = dma.hbm_to_vmem [thread:$0]  %s87_s1, 512, %s89_s20, [#allocation13], %s1883_s3, %s1883_s3, %s1884_s24  }
   0xf   :  { %s25_s26 = sshll.u32 %s1885_s25, 4  ;;  %s47_s5 = sshll.u32 %s2880_s2, 4  ;;  %s26_s26 = int_to_ptr.vmem [resolvable:$true] %s25_s26  ;;  %s48_s5 = int_to_ptr.hbm [resolvable:$true] %s47_s5 }
  0x10   :  { %31 = dma.hbm_to_vmem [thread:$0]  %s24_s23, 1024, %s26_s26, [#allocation4], %s1883_s3, %s1883_s3, %s1884_s24  }
  0x11   :  { %s73_s30 = sshll.u32 %s2882_s4, 4  ;;  %s1886_s9 = smov [#allocation8]   ;;  %s74_s30 = int_to_ptr.hbm [resolvable:$true] %s73_s30 }
  0x12   :  { %s49_s10 = sshll.u32 %s1886_s9, 4  ;;  %s1887_s11 = smov [#allocation11]   ;;  %s50_s10 = int_to_ptr.vmem [resolvable:$true] %s49_s10 }
  0x13   :  { %55 = dma.hbm_to_vmem [thread:$0]  %s48_s5, 8192, %s50_s10, [#allocation7], %s1880_s15, %s1880_s15, %s1881_s16  }
  0x14   :  { %s75_s12 = sshll.u32 %s1887_s11, 4  ;;  %s99_s2 = sshll.u32 %s2884_s6, 4  ;;  %s76_s12 = int_to_ptr.vmem [resolvable:$true] %s75_s12  ;;  %s100_s2 = int_to_ptr.hbm [resolvable:$true] %s99_s2 }
  0x15   :  { %81 = dma.hbm_to_vmem [thread:$0]  %s74_s30, 2048, %s76_s12, [#allocation10], %s1883_s3, %s1883_s3, %s1884_s24  }
  0x16   :  { %s113_s4 = sshll.u32 %s2885_s7, 4  ;;  %s1888_s1 = smov [#allocation14]   ;;  %s114_s4 = int_to_ptr.hbm [resolvable:$true] %s113_s4 }
  0x17   :  { %s101_s19 = sshll.u32 %s1888_s1, 4  ;;  %s1889_s15 = smov [#allocation15]   ;;  %s102_s19 = int_to_ptr.vmem [resolvable:$true] %s101_s19 }
  0x18   :  { %107 = dma.hbm_to_vmem [thread:$0]  %s100_s2, 2048, %s102_s19, [#allocation13], %s1883_s3, %s1883_s3, %s1884_s24  }
  0x19   :  { %s115_s6 = sshll.u32 %s1889_s15, 4  ;;  %s116_s6 = int_to_ptr.vmem [resolvable:$true] %s115_s6 }
  0x1a   :  { %118 = dma.hbm_to_vmem [thread:$0]  %s114_s4, 128, %s116_s6, [#allocation16]  }
  0x1b   :  { %1866 = dma.done.wait [#allocation4], 1024  }
  0x1c   :  { %1867 = vsyncadd [#allocation4], 4294966272 }
  0x1d   :  { %1868 = dma.done.wait [#allocation7], 8320  }
  0x1e   :  { %1869 = vsyncadd [#allocation7], 4294958976 }
  0x1f   :  { %1870 = dma.done.wait [#allocation10], 10240  }
  0x20   :  { %1871 = vsyncadd [#allocation10], 4294957056 }
  0x21   :  { %1872 = dma.done.wait [#allocation13], 2560  }
  0x22   :  { %1873 = vsyncadd [#allocation13], 4294964736 }
  0x23   :  { %1874 = dma.done.wait [#allocation16], 128  }
  0x24   :  { %1875 = vsyncadd [#allocation16], 4294967168  ;;  %v220_v0 = vld [vmem:[#allocation8 + $0x1e0] sm:$0xff]  ;;  %v221_v1 = vld [vmem:[#allocation8 + $0x1e8] sm:$0xff]  ;;  %vm1374_vm0 = vcmask 261120   ;;  %s1891_s7 = smov [#allocation17]  }
  0x25   :  { %v222_v2 = vld [vmem:[#allocation8 + $0x1f0] sm:$0xff]  ;;  %233 = vmatpush.msra.mxu0 %v220_v0  ;;  %274 = vmatpush.msra.mxu1 %v221_v1  ;;  %v223_v3 = vld [vmem:[#allocation8 + $0x1f8] sm:$0xff]  ;;  %v216_v4 = vld [vmem:[#allocation8 + $0x1c0] sm:$0xff]  ;;  %s1471_s16 = sshll.u32 %s1891_s7, 4  ;;  %s1473_s22 = sshll.u32 %s2886_s8, 4  ;;  %s1472_s16 = int_to_ptr.vmem [resolvable:$true] %s1471_s16  ;;  %s1474_s22 = int_to_ptr.hbm [resolvable:$true] %s1473_s22 }
  0x26   :  { %v217_v5 = vld [vmem:[#allocation8 + $0x1c8] sm:$0xff]  ;;  %315 = vmatpush.msra.mxu2 %v222_v2  ;;  %356 = vmatpush.msra.mxu3 %v223_v3  ;;  %v218_v6 = vld [vmem:[#allocation8 + $0x1d0] sm:$0xff]  ;;  %v219_v7 = vld [vmem:[#allocation8 + $0x1d8] sm:$0xff] }
  0x27   :  { %v212_v8 = vld [vmem:[#allocation8 + $0x1a0] sm:$0xff]  ;;  %234 = vmatpush.msra.mxu0 %v216_v4  ;;  %275 = vmatpush.msra.mxu1 %v217_v5  ;;  %v213_v9 = vld [vmem:[#allocation8 + $0x1a8] sm:$0xff]  ;;  %v214_v10 = vld [vmem:[#allocation8 + $0x1b0] sm:$0xff] }
  0x28   :  { %v215_v11 = vld [vmem:[#allocation8 + $0x1b8] sm:$0xff]  ;;  %316 = vmatpush.msra.mxu2 %v218_v6  ;;  %357 = vmatpush.msra.mxu3 %v219_v7  ;;  %v208_v12 = vld [vmem:[#allocation8 + $0x180] sm:$0xff]  ;;  %v209_v13 = vld [vmem:[#allocation8 + $0x188] sm:$0xff] }
  0x29   :  { %235 = vmatpush.msra.mxu0 %v212_v8  ;;  %276 = vmatpush.msra.mxu1 %v213_v9  ;;  %v210_v14 = vld [vmem:[#allocation8 + $0x190] sm:$0xff]  ;;  %v211_v15 = vld [vmem:[#allocation8 + $0x198] sm:$0xff]  ;;  %v204_v16 = vld [vmem:[#allocation8 + $0x160] sm:$0xff] }
  0x2a   :  { %317 = vmatpush.msra.mxu2 %v214_v10  ;;  %358 = vmatpush.msra.mxu3 %v215_v11  ;;  %v205_v17 = vld [vmem:[#allocation8 + $0x168] sm:$0xff]  ;;  %v206_v18 = vld [vmem:[#allocation8 + $0x170] sm:$0xff]  ;;  %v207_v19 = vld [vmem:[#allocation8 + $0x178] sm:$0xff] }
  0x2b   :  { %236 = vmatpush.msra.mxu0 %v208_v12  ;;  %277 = vmatpush.msra.mxu1 %v209_v13  ;;  %v200_v20 = vld [vmem:[#allocation8 + $0x140] sm:$0xff]  ;;  %v201_v21 = vld [vmem:[#allocation8 + $0x148] sm:$0xff]  ;;  %v202_v22 = vld [vmem:[#allocation8 + $0x150] sm:$0xff] }
  0x2c   :  { %318 = vmatpush.msra.mxu2 %v210_v14  ;;  %359 = vmatpush.msra.mxu3 %v211_v15  ;;  %v203_v23 = vld [vmem:[#allocation8 + $0x158] sm:$0xff]  ;;  %v196_v24 = vld [vmem:[#allocation8 + $0x120] sm:$0xff]  ;;  %v197_v25 = vld [vmem:[#allocation8 + $0x128] sm:$0xff] }
  0x2d   :  { %237 = vmatpush.msra.mxu0 %v204_v16  ;;  %278 = vmatpush.msra.mxu1 %v205_v17  ;;  %v198_v26 = vld [vmem:[#allocation8 + $0x130] sm:$0xff]  ;;  %v199_v27 = vld [vmem:[#allocation8 + $0x138] sm:$0xff]  ;;  %v192_v28 = vld [vmem:[#allocation8 + $0x100] sm:$0xff] }
  0x2e   :  { %319 = vmatpush.msra.mxu2 %v206_v18  ;;  %360 = vmatpush.msra.mxu3 %v207_v19  ;;  %v193_v29 = vld [vmem:[#allocation8 + $0x108] sm:$0xff]  ;;  %v194_v30 = vld [vmem:[#allocation8 + $0x110] sm:$0xff]  ;;  %v195_v31 = vld [vmem:[#allocation8 + $0x118] sm:$0xff] }
  0x2f   :  { %238 = vmatpush.msra.mxu0 %v200_v20  ;;  %279 = vmatpush.msra.mxu1 %v201_v21  ;;  %v188_v32 = vld [vmem:[#allocation8 + $0xe0] sm:$0xff]  ;;  %v189_v33 = vld [vmem:[#allocation8 + $0xe8] sm:$0xff]  ;;  %v190_v34 = vld [vmem:[#allocation8 + $0xf0] sm:$0xff] }
  0x30   :  { %320 = vmatpush.msra.mxu2 %v202_v22  ;;  %361 = vmatpush.msra.mxu3 %v203_v23  ;;  %v191_v35 = vld [vmem:[#allocation8 + $0xf8] sm:$0xff]  ;;  %v184_v36 = vld [vmem:[#allocation8 + $0xc0] sm:$0xff]  ;;  %v185_v37 = vld [vmem:[#allocation8 + $0xc8] sm:$0xff] }
  0x31   :  { %239 = vmatpush.msra.mxu0 %v196_v24  ;;  %280 = vmatpush.msra.mxu1 %v197_v25  ;;  %v186_v38 = vld [vmem:[#allocation8 + $0xd0] sm:$0xff]  ;;  %v187_v39 = vld [vmem:[#allocation8 + $0xd8] sm:$0xff]  ;;  %v180_v40 = vld [vmem:[#allocation8 + $0xa0] sm:$0xff] }
  0x32   :  { %321 = vmatpush.msra.mxu2 %v198_v26  ;;  %362 = vmatpush.msra.mxu3 %v199_v27  ;;  %v181_v41 = vld [vmem:[#allocation8 + $0xa8] sm:$0xff]  ;;  %v182_v42 = vld [vmem:[#allocation8 + $0xb0] sm:$0xff]  ;;  %v183_v43 = vld [vmem:[#allocation8 + $0xb8] sm:$0xff] }
  0x33   :  { %240 = vmatpush.msra.mxu0 %v192_v28  ;;  %281 = vmatpush.msra.mxu1 %v193_v29  ;;  %v176_v44 = vld [vmem:[#allocation8 + $0x80] sm:$0xff]  ;;  %v177_v45 = vld [vmem:[#allocation8 + $0x88] sm:$0xff]  ;;  %v178_v46 = vld [vmem:[#allocation8 + $0x90] sm:$0xff] }
  0x34   :  { %322 = vmatpush.msra.mxu2 %v194_v30  ;;  %363 = vmatpush.msra.mxu3 %v195_v31  ;;  %v179_v47 = vld [vmem:[#allocation8 + $0x98] sm:$0xff]  ;;  %v172_v48 = vld [vmem:[#allocation8 + $0x60] sm:$0xff]  ;;  %v173_v49 = vld [vmem:[#allocation8 + $0x68] sm:$0xff] }
  0x35   :  { %241 = vmatpush.msra.mxu0 %v188_v32  ;;  %282 = vmatpush.msra.mxu1 %v189_v33  ;;  %v174_v50 = vld [vmem:[#allocation8 + $0x70] sm:$0xff]  ;;  %v175_v51 = vld [vmem:[#allocation8 + $0x78] sm:$0xff]  ;;  %v168_v52 = vld [vmem:[#allocation8 + $0x40] sm:$0xff] }
  0x36   :  { %323 = vmatpush.msra.mxu2 %v190_v34  ;;  %364 = vmatpush.msra.mxu3 %v191_v35  ;;  %v169_v53 = vld [vmem:[#allocation8 + $0x48] sm:$0xff]  ;;  %v170_v54 = vld [vmem:[#allocation8 + $0x50] sm:$0xff]  ;;  %v171_v55 = vld [vmem:[#allocation8 + $0x58] sm:$0xff] }
  0x37   :  { %242 = vmatpush.msra.mxu0 %v184_v36  ;;  %283 = vmatpush.msra.mxu1 %v185_v37  ;;  %v164_v56 = vld [vmem:[#allocation8 + $0x20] sm:$0xff]  ;;  %v165_v57 = vld [vmem:[#allocation8 + $0x28] sm:$0xff]  ;;  %v166_v58 = vld [vmem:[#allocation8 + $0x30] sm:$0xff] }
  0x38   :  { %324 = vmatpush.msra.mxu2 %v186_v38  ;;  %365 = vmatpush.msra.mxu3 %v187_v39  ;;  %v167_v59 = vld [vmem:[#allocation8 + $0x38] sm:$0xff]  ;;  %v160_v60 = vld [vmem:[#allocation8] sm:$0xff]  ;;  %v161_v61 = vld [vmem:[#allocation8 + $0x8] sm:$0xff] }
  0x39   :  { %243 = vmatpush.msra.mxu0 %v180_v40  ;;  %284 = vmatpush.msra.mxu1 %v181_v41  ;;  %v162_v62 = vld [vmem:[#allocation8 + $0x10] sm:$0xff]  ;;  %v163_v63 = vld [vmem:[#allocation8 + $0x18] sm:$0xff]  ;;  %v1973_v1 = vld [vmem:[#allocation9 + $0x1e0] sm:$0xff] }
  0x3a   :  { %325 = vmatpush.msra.mxu2 %v182_v42  ;;  %366 = vmatpush.msra.mxu3 %v183_v43  ;;  %v152_v0 = vld [vmem:[#allocation3] sm:$0xff]  ;;  %v1975_v2 = vld [vmem:[#allocation9 + $0x1e8] sm:$0xff]  ;;  %v1979_v4 = vld [vmem:[#allocation9 + $0x1f0] sm:$0xff] }
  0x3b   :  { %244 = vmatpush.msra.mxu0 %v176_v44  ;;  %285 = vmatpush.msra.mxu1 %v177_v45  ;;  %v1977_v3 = vld [vmem:[#allocation9 + $0x1f8] sm:$0xff]  ;;  %v1981_v5 = vld [vmem:[#allocation9 + $0x1c0] sm:$0xff]  ;;  %v1983_v6 = vld [vmem:[#allocation9 + $0x1c8] sm:$0xff] }
  0x3c   :  { %326 = vmatpush.msra.mxu2 %v178_v46  ;;  %367 = vmatpush.msra.mxu3 %v179_v47  ;;  %v1987_v7 = vld [vmem:[#allocation9 + $0x1d8] sm:$0xff]  ;;  %v1989_v8 = vld [vmem:[#allocation9 + $0x1d0] sm:$0xff]  ;;  %v1993_v9 = vld [vmem:[#allocation9 + $0x1a0] sm:$0xff] }
  0x3d   :  { %245 = vmatpush.msra.mxu0 %v172_v48  ;;  %286 = vmatpush.msra.mxu1 %v173_v49  ;;  %v1995_v10 = vld [vmem:[#allocation9 + $0x1a8] sm:$0xff]  ;;  %v1997_v11 = vld [vmem:[#allocation9 + $0x1b8] sm:$0xff]  ;;  %v2001_v12 = vld [vmem:[#allocation9 + $0x1b0] sm:$0xff] }
  0x3e   :  { %327 = vmatpush.msra.mxu2 %v174_v50  ;;  %368 = vmatpush.msra.mxu3 %v175_v51  ;;  %v153_v13 = vld [vmem:[#allocation3 + $0x8] sm:$0xff]  ;;  %v2010_v15 = vld [vmem:[#allocation9 + $0x188] sm:$0xff]  ;;  %v2013_v16 = vld [vmem:[#allocation9 + $0x198] sm:$0xff] }
  0x3f   :  { %246 = vmatpush.msra.mxu0 %v168_v52  ;;  %287 = vmatpush.msra.mxu1 %v169_v53  ;;  %v2008_v14 = vld [vmem:[#allocation9 + $0x180] sm:$0xff]  ;;  %v2015_v17 = vld [vmem:[#allocation9 + $0x190] sm:$0xff]  ;;  %v2019_v19 = vld [vmem:[#allocation9 + $0x168] sm:$0xff] }
  0x40   :  { %328 = vmatpush.msra.mxu2 %v170_v54  ;;  %369 = vmatpush.msra.mxu3 %v171_v55  ;;  %v2017_v18 = vld [vmem:[#allocation9 + $0x160] sm:$0xff]  ;;  %v2023_v20 = vld [vmem:[#allocation9 + $0x178] sm:$0xff]  ;;  %v2025_v21 = vld [vmem:[#allocation9 + $0x170] sm:$0xff] }
  0x41   :  { %247 = vmatpush.msra.mxu0 %v164_v56  ;;  %288 = vmatpush.msra.mxu1 %v165_v57  ;;  %v2029_v22 = vld [vmem:[#allocation9 + $0x140] sm:$0xff]  ;;  %v2031_v23 = vld [vmem:[#allocation9 + $0x148] sm:$0xff]  ;;  %v2035_v24 = vld [vmem:[#allocation9 + $0x158] sm:$0xff] }
  0x42   :  { %329 = vmatpush.msra.mxu2 %v166_v58  ;;  %370 = vmatpush.msra.mxu3 %v167_v59  ;;  %v2037_v25 = vld [vmem:[#allocation9 + $0x150] sm:$0xff]  ;;  %v154_v26 = vld [vmem:[#allocation3 + $0x10] sm:$0xff]  ;;  %v2044_v27 = vld [vmem:[#allocation9 + $0x120] sm:$0xff] }
  0x43   :  { %248 = vmatpush.msra.mxu0 %v160_v60  ;;  %289 = vmatpush.msra.mxu1 %v161_v61  ;;  %v2046_v28 = vld [vmem:[#allocation9 + $0x128] sm:$0xff]  ;;  %v2049_v29 = vld [vmem:[#allocation9 + $0x138] sm:$0xff]  ;;  %v2051_v30 = vld [vmem:[#allocation9 + $0x130] sm:$0xff] }
  0x44   :  { %330 = vmatpush.msra.mxu2 %v162_v62  ;;  %371 = vmatpush.msra.mxu3 %v163_v63  ;;  %v2053_v31 = vld [vmem:[#allocation9 + $0x100] sm:$0xff]  ;;  %v2055_v32 = vld [vmem:[#allocation9 + $0x108] sm:$0xff]  ;;  %v2059_v33 = vld [vmem:[#allocation9 + $0x118] sm:$0xff] }
  0x45   :  { %249 = vmatmul.f32.vlgmr.msra.gmra.mxu0 %v152_v0  ;;  %290 = vmatmul.f32.vlgmr.msra.gmra.mxu1 %v152_v0  ;;  %v2061_v34 = vld [vmem:[#allocation9 + $0x110] sm:$0xff]  ;;  %v2065_v35 = vld [vmem:[#allocation9 + $0xe0] sm:$0xff]  ;;  %v2067_v36 = vld [vmem:[#allocation9 + $0xe8] sm:$0xff] }
  0x46   :  { %331 = vmatmul.f32.vlgmr.msra.gmra.mxu2 %v152_v0  ;;  %372 = vmatmul.f32.vlgmr.msra.gmra.mxu3 %v152_v0  ;;  %v2071_v37 = vld [vmem:[#allocation9 + $0xf8] sm:$0xff]  ;;  %v2073_v38 = vld [vmem:[#allocation9 + $0xf0] sm:$0xff]  ;;  %v2080_v40 = vld [vmem:[#allocation9 + $0xc0] sm:$0xff] }
  0x47   :  { %497 = vmatpush.msrb.mxu0 %v1973_v1  ;;  %517 = vmatpush.msrb.mxu1 %v1975_v2  ;;  %v155_v39 = vld [vmem:[#allocation3 + $0x18] sm:$0xff]  ;;  %v2082_v41 = vld [vmem:[#allocation9 + $0xc8] sm:$0xff]  ;;  %v2085_v42 = vld [vmem:[#allocation9 + $0xd8] sm:$0xff] }
  0x48   :  { %557 = vmatpush.msrb.mxu3 %v1977_v3  ;;  %537 = vmatpush.msrb.mxu2 %v1979_v4  ;;  %v2087_v43 = vld [vmem:[#allocation9 + $0xd0] sm:$0xff]  ;;  %v2089_v44 = vld [vmem:[#allocation9 + $0xa0] sm:$0xff]  ;;  %v2091_v45 = vld [vmem:[#allocation9 + $0xa8] sm:$0xff] }
  0x49   :  { %498 = vmatpush.msrb.mxu0 %v1981_v5  ;;  %518 = vmatpush.msrb.mxu1 %v1983_v6  ;;  %2977 = vst [vmem:[#allocation24_spill] sm:$0xff] %v2089_v44  ;;  %v2095_v46 = vld [vmem:[#allocation9 + $0xb8] sm:$0xff]  ;;  %v2097_v47 = vld [vmem:[#allocation9 + $0xb0] sm:$0xff]  ;;  %v2101_v48 = vld [vmem:[#allocation9 + $0x80] sm:$0xff] }
  0x4a   :  { %558 = vmatpush.msrb.mxu3 %v1987_v7  ;;  %538 = vmatpush.msrb.mxu2 %v1989_v8  ;;  %2978 = vst [vmem:[#allocation25_spill] sm:$0xff] %v2091_v45  ;;  %v2103_v49 = vld [vmem:[#allocation9 + $0x88] sm:$0xff]  ;;  %v2107_v50 = vld [vmem:[#allocation9 + $0x98] sm:$0xff]  ;;  %v2109_v51 = vld [vmem:[#allocation9 + $0x90] sm:$0xff] }
  0x4b   :  { %499 = vmatpush.msrb.mxu0 %v1993_v9  ;;  %519 = vmatpush.msrb.mxu1 %v1995_v10  ;;  %2979 = vst [vmem:[#allocation26_spill] sm:$0xff] %v2095_v46  ;;  %v156_v52 = vld [vmem:[#allocation3 + $0x20] sm:$0xff]  ;;  %v2116_v53 = vld [vmem:[#allocation9 + $0x60] sm:$0xff]  ;;  %v2118_v54 = vld [vmem:[#allocation9 + $0x68] sm:$0xff] }
  0x4c   :  { %559 = vmatpush.msrb.mxu3 %v1997_v11  ;;  %539 = vmatpush.msrb.mxu2 %v2001_v12  ;;  %2980 = vst [vmem:[#allocation27_spill] sm:$0xff] %v2097_v47  ;;  %v2121_v55 = vld [vmem:[#allocation9 + $0x78] sm:$0xff]  ;;  %v2123_v56 = vld [vmem:[#allocation9 + $0x70] sm:$0xff]  ;;  %v2125_v57 = vld [vmem:[#allocation9 + $0x40] sm:$0xff] }
  0x4d   :  { %252 = vmatmul.f32.gmra.mxu0 %v153_v13  ;;  %293 = vmatmul.f32.gmra.mxu1 %v153_v13  ;;  %2981 = vst [vmem:[#allocation28_spill] sm:$0xff] %v2101_v48  ;;  %v2127_v58 = vld [vmem:[#allocation9 + $0x48] sm:$0xff]  ;;  %v2131_v59 = vld [vmem:[#allocation9 + $0x58] sm:$0xff]  ;;  %v2133_v60 = vld [vmem:[#allocation9 + $0x50] sm:$0xff] }
  0x4e   :  { %334 = vmatmul.f32.gmra.mxu2 %v153_v13  ;;  %375 = vmatmul.f32.gmra.mxu3 %v153_v13  ;;  %2982 = vst [vmem:[#allocation29_spill] sm:$0xff] %v2103_v49  ;;  %v2137_v61 = vld [vmem:[#allocation9 + $0x20] sm:$0xff]  ;;  %v2139_v62 = vld [vmem:[#allocation9 + $0x28] sm:$0xff]  ;;  %v2143_v63 = vld [vmem:[#allocation9 + $0x38] sm:$0xff] }
  0x4f   :  { %500 = vmatpush.msrb.mxu0 %v2008_v14  ;;  %520 = vmatpush.msrb.mxu1 %v2010_v15  ;;  %2983 = vst [vmem:[#allocation30_spill] sm:$0xff] %v2107_v50  ;;  %v2145_v0 = vld [vmem:[#allocation9 + $0x30] sm:$0xff]  ;;  %v157_v13 = vld [vmem:[#allocation3 + $0x28] sm:$0xff] }
  0x50   :  { %560 = vmatpush.msrb.mxu3 %v2013_v16  ;;  %540 = vmatpush.msrb.mxu2 %v2015_v17  ;;  %2984 = vst [vmem:[#allocation31_spill] sm:$0xff] %v2109_v51 }
  0x51   :  { %501 = vmatpush.msrb.mxu0 %v2017_v18  ;;  %521 = vmatpush.msrb.mxu1 %v2019_v19  ;;  %2985 = vst [vmem:[#allocation32_spill] sm:$0xff] %v2116_v53 }
  0x52   :  { %561 = vmatpush.msrb.mxu3 %v2023_v20  ;;  %541 = vmatpush.msrb.mxu2 %v2025_v21  ;;  %2986 = vst [vmem:[#allocation33_spill] sm:$0xff] %v2118_v54 }
  0x53   :  { %502 = vmatpush.msrb.mxu0 %v2029_v22  ;;  %522 = vmatpush.msrb.mxu1 %v2031_v23  ;;  %2987 = vst [vmem:[#allocation34_spill] sm:$0xff] %v2121_v55 }
  0x54   :  { %562 = vmatpush.msrb.mxu3 %v2035_v24  ;;  %542 = vmatpush.msrb.mxu2 %v2037_v25  ;;  %2988 = vst [vmem:[#allocation35_spill] sm:$0xff] %v2123_v56 }
  0x55   :  { %255 = vmatmul.f32.gmra.mxu0 %v154_v26  ;;  %296 = vmatmul.f32.gmra.mxu1 %v154_v26  ;;  %2989 = vst [vmem:[#allocation36_spill] sm:$0xff] %v2125_v57 }
  0x56   :  { %337 = vmatmul.f32.gmra.mxu2 %v154_v26  ;;  %378 = vmatmul.f32.gmra.mxu3 %v154_v26  ;;  %2990 = vst [vmem:[#allocation37_spill] sm:$0xff] %v2127_v58  ;;  %v2152_v26 = vld [vmem:[#allocation9] sm:$0xff] }
  0x57   :  { %503 = vmatpush.msrb.mxu0 %v2044_v27  ;;  %523 = vmatpush.msrb.mxu1 %v2046_v28  ;;  %2991 = vst [vmem:[#allocation38_spill] sm:$0xff] %v2131_v59 }
  0x58   :  { %563 = vmatpush.msrb.mxu3 %v2049_v29  ;;  %543 = vmatpush.msrb.mxu2 %v2051_v30  ;;  %2992 = vst [vmem:[#allocation39_spill] sm:$0xff] %v2133_v60 }
  0x59   :  { %504 = vmatpush.msrb.mxu0 %v2053_v31  ;;  %524 = vmatpush.msrb.mxu1 %v2055_v32  ;;  %2993 = vst [vmem:[#allocation40_spill] sm:$0xff] %v2137_v61 }
  0x5a   :  { %564 = vmatpush.msrb.mxu3 %v2059_v33  ;;  %544 = vmatpush.msrb.mxu2 %v2061_v34  ;;  %2994 = vst [vmem:[#allocation41_spill] sm:$0xff] %v2139_v62 }
  0x5b   :  { %505 = vmatpush.msrb.mxu0 %v2065_v35  ;;  %525 = vmatpush.msrb.mxu1 %v2067_v36  ;;  %2995 = vst [vmem:[#allocation42_spill] sm:$0xff] %v2143_v63 }
  0x5c   :  { %565 = vmatpush.msrb.mxu3 %v2071_v37  ;;  %545 = vmatpush.msrb.mxu2 %v2073_v38  ;;  %2996 = vst [vmem:[#allocation43_spill] sm:$0xff] %v2145_v0 }
  0x5d   :  { %258 = vmatmul.f32.gmra.mxu0 %v155_v39  ;;  %299 = vmatmul.f32.gmra.mxu1 %v155_v39  ;;  %2997 = vst [vmem:[#allocation44_spill] sm:$0xff] %v2152_v26 }
  0x5e   :  { %340 = vmatmul.f32.gmra.mxu2 %v155_v39  ;;  %381 = vmatmul.f32.gmra.mxu3 %v155_v39  ;;  %v2154_v39 = vld [vmem:[#allocation9 + $0x8] sm:$0xff] }
  0x5f   :  { %506 = vmatpush.msrb.mxu0 %v2080_v40  ;;  %526 = vmatpush.msrb.mxu1 %v2082_v41  ;;  %2998 = vst [vmem:[#allocation45_spill] sm:$0xff] %v2154_v39 }
  0x60   :  { %566 = vmatpush.msrb.mxu3 %v2085_v42  ;;  %546 = vmatpush.msrb.mxu2 %v2087_v43 }
  0x61   :  { %507 = vmatpush.msrb.mxu0 %v2089_v44  ;;  %527 = vmatpush.msrb.mxu1 %v2091_v45 }
  0x62   :  { %567 = vmatpush.msrb.mxu3 %v2095_v46  ;;  %547 = vmatpush.msrb.mxu2 %v2097_v47 }
  0x63   :  { %508 = vmatpush.msrb.mxu0 %v2101_v48  ;;  %528 = vmatpush.msrb.mxu1 %v2103_v49 }
  0x64   :  { %568 = vmatpush.msrb.mxu3 %v2107_v50  ;;  %548 = vmatpush.msrb.mxu2 %v2109_v51 }
  0x65   :  { %261 = vmatmul.f32.gmra.mxu0 %v156_v52  ;;  %302 = vmatmul.f32.gmra.mxu1 %v156_v52 }
  0x66   :  { %343 = vmatmul.f32.gmra.mxu2 %v156_v52  ;;  %384 = vmatmul.f32.gmra.mxu3 %v156_v52  ;;  %v2157_v52 = vld [vmem:[#allocation9 + $0x18] sm:$0xff] }
  0x67   :  { %509 = vmatpush.msrb.mxu0 %v2116_v53  ;;  %529 = vmatpush.msrb.mxu1 %v2118_v54  ;;  %2999 = vst [vmem:[#allocation46_spill] sm:$0xff] %v2157_v52 }
  0x68   :  { %569 = vmatpush.msrb.mxu3 %v2121_v55  ;;  %549 = vmatpush.msrb.mxu2 %v2123_v56 }
  0x69   :  { %510 = vmatpush.msrb.mxu0 %v2125_v57  ;;  %530 = vmatpush.msrb.mxu1 %v2127_v58  ;;  %v2159_v58 = vld [vmem:[#allocation9 + $0x10] sm:$0xff] }
  0x6a   :  { %570 = vmatpush.msrb.mxu3 %v2131_v59  ;;  %550 = vmatpush.msrb.mxu2 %v2133_v60  ;;  %3000 = vst [vmem:[#allocation47_spill] sm:$0xff] %v2159_v58 }
  0x6b   :  { %511 = vmatpush.msrb.mxu0 %v2137_v61  ;;  %531 = vmatpush.msrb.mxu1 %v2139_v62 }
  0x6c   :  { %571 = vmatpush.msrb.mxu3 %v2143_v63  ;;  %551 = vmatpush.msrb.mxu2 %v2145_v0  ;;  %v158_v63 = vld [vmem:[#allocation3 + $0x30] sm:$0xff] }
  0x6d   :  { %264 = vmatmul.f32.gmra.mxu0 %v157_v13  ;;  %305 = vmatmul.f32.gmra.mxu1 %v157_v13 }
  0x6e   :  { %346 = vmatmul.f32.gmra.mxu2 %v157_v13  ;;  %387 = vmatmul.f32.gmra.mxu3 %v157_v13  ;;  %v159_v13 = vld [vmem:[#allocation3 + $0x38] sm:$0xff] }
  0x6f   :  { %512 = vmatpush.msrb.mxu0 %v2152_v26  ;;  %532 = vmatpush.msrb.mxu1 %v2154_v39 }
  0x70   :  { %572 = vmatpush.msrb.mxu3 %v2157_v52  ;;  %552 = vmatpush.msrb.mxu2 %v2159_v58 }
  0x71   :  { %604 = vmatpush.msra.mxu0 %v1973_v1  ;;  %624 = vmatpush.msra.mxu1 %v1975_v2 }
  0x72   :  { %644 = vmatpush.msra.mxu2 %v1979_v4  ;;  %664 = vmatpush.msra.mxu3 %v1977_v3 }
  0x73   :  { %605 = vmatpush.msra.mxu0 %v1981_v5  ;;  %625 = vmatpush.msra.mxu1 %v1983_v6 }
  0x74   :  { %645 = vmatpush.msra.mxu2 %v1989_v8  ;;  %665 = vmatpush.msra.mxu3 %v1987_v7 }
  0x75   :  { %267 = vmatmul.f32.gmra.mxu0 %v158_v63  ;;  %308 = vmatmul.f32.gmra.mxu1 %v158_v63 }
  0x76   :  { %349 = vmatmul.f32.gmra.mxu2 %v158_v63  ;;  %390 = vmatmul.f32.gmra.mxu3 %v158_v63  ;;  %v1890_v63 = vmov 0.0  }
  0x77   :  { %606 = vmatpush.msra.mxu0 %v1993_v9  ;;  %626 = vmatpush.msra.mxu1 %v1995_v10 }
  0x78   :  { %646 = vmatpush.msra.mxu2 %v2001_v12  ;;  %666 = vmatpush.msra.mxu3 %v1997_v11 }
  0x79   :  { %607 = vmatpush.msra.mxu0 %v2008_v14  ;;  %627 = vmatpush.msra.mxu1 %v2010_v15 }
  0x7a   :  { %647 = vmatpush.msra.mxu2 %v2015_v17  ;;  %667 = vmatpush.msra.mxu3 %v2013_v16 }
  0x7b   :  { %608 = vmatpush.msra.mxu0 %v2017_v18  ;;  %628 = vmatpush.msra.mxu1 %v2019_v19 }
  0x7c   :  { %648 = vmatpush.msra.mxu2 %v2025_v21  ;;  %668 = vmatpush.msra.mxu3 %v2023_v20 }
  0x7d   :  { %270 = vmatmul.f32.gmra.mxu0 %v159_v13  ;;  %311 = vmatmul.f32.gmra.mxu1 %v159_v13 }
  0x7e   :  { %352 = vmatmul.f32.gmra.mxu2 %v159_v13  ;;  %393 = vmatmul.f32.gmra.mxu3 %v159_v13  ;;  %v3001_v13 = vld [vmem:[#allocation37_spill] sm:$0xff] }
  0x7f   :  { %609 = vmatpush.msra.mxu0 %v2029_v22  ;;  %629 = vmatpush.msra.mxu1 %v2031_v23 }
  0x80   :  { %649 = vmatpush.msra.mxu2 %v2037_v25  ;;  %669 = vmatpush.msra.mxu3 %v2035_v24 }
  0x81   :  { %610 = vmatpush.msra.mxu0 %v2044_v27  ;;  %630 = vmatpush.msra.mxu1 %v2046_v28 }
  0x82   :  { %650 = vmatpush.msra.mxu2 %v2051_v30  ;;  %670 = vmatpush.msra.mxu3 %v2049_v29 }
  0x83   :  { %611 = vmatpush.msra.mxu0 %v2053_v31  ;;  %631 = vmatpush.msra.mxu1 %v2055_v32 }
  0x84   :  { %651 = vmatpush.msra.mxu2 %v2061_v34  ;;  %671 = vmatpush.msra.mxu3 %v2059_v33 }
  0x85   :  { %513 = vmatmul.f32.vlgmr.msrb.gmra.mxu0 %v1890_v63  ;;  %533 = vmatmul.f32.vlgmr.msrb.gmra.mxu1 %v1890_v63 }
  0x86   :  { %553 = vmatmul.f32.vlgmr.msrb.gmra.mxu2 %v1890_v63  ;;  %573 = vmatmul.f32.vlgmr.msrb.gmra.mxu3 %v1890_v63  ;;  %v3002_v63 = vld [vmem:[#allocation42_spill] sm:$0xff] }
  0x87   :  { %612 = vmatpush.msra.mxu0 %v2065_v35  ;;  %632 = vmatpush.msra.mxu1 %v2067_v36 }
  0x88   :  { %652 = vmatpush.msra.mxu2 %v2073_v38  ;;  %672 = vmatpush.msra.mxu3 %v2071_v37 }
  0x89   :  { %613 = vmatpush.msra.mxu0 %v2080_v40  ;;  %633 = vmatpush.msra.mxu1 %v2082_v41 }
  0x8a   :  { %653 = vmatpush.msra.mxu2 %v2087_v43  ;;  %673 = vmatpush.msra.mxu3 %v2085_v42 }
  0x8b   :  { %614 = vmatpush.msra.mxu0 %v2089_v44  ;;  %634 = vmatpush.msra.mxu1 %v2091_v45 }
  0x8c   :  { %654 = vmatpush.msra.mxu2 %v2097_v47  ;;  %674 = vmatpush.msra.mxu3 %v2095_v46 }
  0x8d   :  { %615 = vmatpush.msra.mxu0 %v2101_v48  ;;  %635 = vmatpush.msra.mxu1 %v2103_v49 }
  0x8e   :  { %655 = vmatpush.msra.mxu2 %v2109_v51  ;;  %675 = vmatpush.msra.mxu3 %v2107_v50 }
  0x8f   :  { %616 = vmatpush.msra.mxu0 %v2116_v53  ;;  %636 = vmatpush.msra.mxu1 %v2118_v54 }
  0x90   :  { %656 = vmatpush.msra.mxu2 %v2123_v56  ;;  %676 = vmatpush.msra.mxu3 %v2121_v55 }
  0x91   :  { %617 = vmatpush.msra.mxu0 %v2125_v57  ;;  %637 = vmatpush.msra.mxu1 %v3001_v13 }
  0x92   :  { %657 = vmatpush.msra.mxu2 %v2133_v60  ;;  %677 = vmatpush.msra.mxu3 %v2131_v59 }
  0x93   :  { %618 = vmatpush.msra.mxu0 %v2137_v61  ;;  %638 = vmatpush.msra.mxu1 %v2139_v62 }
  0x94   :  { %658 = vmatpush.msra.mxu2 %v2145_v0  ;;  %678 = vmatpush.msra.mxu3 %v3002_v63 }
  0x95   :  { %619 = vmatpush.msra.mxu0 %v2152_v26  ;;  %639 = vmatpush.msra.mxu1 %v2154_v39 }
  0x96   :  { %659 = vmatpush.msra.mxu2 %v2159_v58  ;;  %679 = vmatpush.msra.mxu3 %v2157_v52 }
  0x97   :  { %711 = vmatpush.msrb.mxu0 %v1973_v1  ;;  %731 = vmatpush.msrb.mxu1 %v1975_v2 }
  0x98   :  { %751 = vmatpush.msrb.mxu2 %v1979_v4  ;;  %771 = vmatpush.msrb.mxu3 %v1977_v3 }
  0x99   :  { %712 = vmatpush.msrb.mxu0 %v1981_v5  ;;  %732 = vmatpush.msrb.mxu1 %v1983_v6 }
  0x9a   :  { %752 = vmatpush.msrb.mxu2 %v1989_v8  ;;  %772 = vmatpush.msrb.mxu3 %v1987_v7 }
  0x9b   :  { %713 = vmatpush.msrb.mxu0 %v1993_v9  ;;  %733 = vmatpush.msrb.mxu1 %v1995_v10 }
  0x9c   :  { %753 = vmatpush.msrb.mxu2 %v2001_v12  ;;  %773 = vmatpush.msrb.mxu3 %v1997_v11 }
  0x9d   :  { %714 = vmatpush.msrb.mxu0 %v2008_v14  ;;  %734 = vmatpush.msrb.mxu1 %v2010_v15 }
  0x9e   :  { %754 = vmatpush.msrb.mxu2 %v2015_v17  ;;  %774 = vmatpush.msrb.mxu3 %v2013_v16 }
  0x9f   :  { %715 = vmatpush.msrb.mxu0 %v2017_v18  ;;  %735 = vmatpush.msrb.mxu1 %v2019_v19 }
  0xa0   :  { %755 = vmatpush.msrb.mxu2 %v2025_v21  ;;  %775 = vmatpush.msrb.mxu3 %v2023_v20 }
  0xa1   :  { %716 = vmatpush.msrb.mxu0 %v2029_v22  ;;  %736 = vmatpush.msrb.mxu1 %v2031_v23 }
  0xa2   :  { %756 = vmatpush.msrb.mxu2 %v2037_v25  ;;  %776 = vmatpush.msrb.mxu3 %v2035_v24 }
  0xa3   :  { %717 = vmatpush.msrb.mxu0 %v2044_v27  ;;  %737 = vmatpush.msrb.mxu1 %v2046_v28 }
  0xa4   :  { %757 = vmatpush.msrb.mxu2 %v2051_v30  ;;  %777 = vmatpush.msrb.mxu3 %v2049_v29 }
  0xa5   :  { %718 = vmatpush.msrb.mxu0 %v2053_v31  ;;  %738 = vmatpush.msrb.mxu1 %v2055_v32 }
  0xa6   :  { %758 = vmatpush.msrb.mxu2 %v2061_v34  ;;  %778 = vmatpush.msrb.mxu3 %v2059_v33 }
  0xa7   :  { %719 = vmatpush.msrb.mxu0 %v2065_v35  ;;  %739 = vmatpush.msrb.mxu1 %v2067_v36 }
  0xa8   :  { %759 = vmatpush.msrb.mxu2 %v2073_v38  ;;  %779 = vmatpush.msrb.mxu3 %v2071_v37 }
  0xa9   :  { %720 = vmatpush.msrb.mxu0 %v2080_v40  ;;  %740 = vmatpush.msrb.mxu1 %v2082_v41 }
  0xaa   :  { %760 = vmatpush.msrb.mxu2 %v2087_v43  ;;  %780 = vmatpush.msrb.mxu3 %v2085_v42 }
  0xab   :  { %721 = vmatpush.msrb.mxu0 %v2089_v44  ;;  %741 = vmatpush.msrb.mxu1 %v2091_v45 }
  0xac   :  { %761 = vmatpush.msrb.mxu2 %v2097_v47  ;;  %781 = vmatpush.msrb.mxu3 %v2095_v46 }
  0xad   :  { %722 = vmatpush.msrb.mxu0 %v2101_v48  ;;  %742 = vmatpush.msrb.mxu1 %v2103_v49 }
  0xae   :  { %762 = vmatpush.msrb.mxu2 %v2109_v51  ;;  %782 = vmatpush.msrb.mxu3 %v2107_v50 }
  0xaf   :  { %723 = vmatpush.msrb.mxu0 %v2116_v53  ;;  %743 = vmatpush.msrb.mxu1 %v2118_v54 }
  0xb0   :  { %763 = vmatpush.msrb.mxu2 %v2123_v56  ;;  %783 = vmatpush.msrb.mxu3 %v2121_v55 }
  0xb1   :  { %724 = vmatpush.msrb.mxu0 %v2125_v57  ;;  %744 = vmatpush.msrb.mxu1 %v3001_v13  ;;  %v151_v57 = vld [vmem:[#allocation15] ss:$2 sm:$0xf] }
  0xb2   :  { %764 = vmatpush.msrb.mxu2 %v2133_v60  ;;  %784 = vmatpush.msrb.mxu3 %v2131_v59  ;;  %v225_v59 = vperm.slane %v151_v57, 0  ;;  %v226_v55 = vperm.slane %v151_v57, 1 }
  0xb3   :  { %725 = vmatpush.msrb.mxu0 %v2137_v61  ;;  %745 = vmatpush.msrb.mxu1 %v2139_v62 }
  0xb4   :  { %765 = vmatpush.msrb.mxu2 %v2145_v0  ;;  %785 = vmatpush.msrb.mxu3 %v3002_v63 }
  0xb5   :  { %726 = vmatpush.msrb.mxu0 %v2152_v26  ;;  %746 = vmatpush.msrb.mxu1 %v2154_v39  ;;  %v2301_v39 = vperm.slane %v151_v57, 2 }
  0xb6   :  { %766 = vmatpush.msrb.mxu2 %v2159_v58  ;;  %786 = vmatpush.msrb.mxu3 %v2157_v52  ;;  %v2303_v58 = vperm.slane %v151_v57, 3 }
  0xc2   :  { %v250_v13 = vpop.f32.mrf.mxu0  ;;  %v291_v60 = vpop.f32.mrf.mxu1 }
  0xc9   :  { %v2293_v61 = vpop.f32.mrf.mxu2  ;;  %v2295_v62 = vpop.f32.mrf.mxu3 }
  0xca   :  { %v253_v0 = vpop.f32.mrf.mxu0  ;;  %v294_v56 = vpop.f32.mrf.mxu1 }
  0xcb   :  { %v2297_v63 = vadd.f32 %v253_v0, %v225_v59  ;;  %v2299_v26 = vadd.f32 %v294_v56, %v226_v55 }
  0xcd   :  { %3003 = vst [vmem:[#allocation48_spill] sm:$0xff] %v2297_v63 }
  0xce   :  { %3004 = vst [vmem:[#allocation49_spill] sm:$0xff] %v2299_v26 }
  0xd1   :  { %v335_v52 = vpop.f32.mrf.mxu2  ;;  %v376_v54 = vpop.f32.mrf.mxu3 }
  0xd2   :  { %v2306_v53 = vadd.f32 %v335_v52, %v2301_v39  ;;  %v2309_v50 = vadd.f32 %v376_v54, %v2303_v58  ;;  %v256_v51 = vpop.f32.mrf.mxu0  ;;  %v297_v49 = vpop.f32.mrf.mxu1 }
  0xd3   :  { %v2311_v48 = vadd.f32 %v256_v51, %v225_v59  ;;  %v2313_v0 = vadd.f32 %v297_v49, %v226_v55 }
  0xd4   :  { %3005 = vst [vmem:[#allocation50_spill] sm:$0xff] %v2306_v53 }
  0xd5   :  { %3006 = vst [vmem:[#allocation51_spill] sm:$0xff] %v2309_v50 }
  0xd6   :  { %3007 = vst [vmem:[#allocation52_spill] sm:$0xff] %v2311_v48 }
  0xd7   :  { %3008 = vst [vmem:[#allocation53_spill] sm:$0xff] %v2313_v0 }
  0xd9   :  { %v338_v56 = vpop.f32.mrf.mxu2  ;;  %v379_v26 = vpop.f32.mrf.mxu3 }
  0xda   :  { %v2316_v63 = vadd.f32 %v338_v56, %v2301_v39  ;;  %v2319_v57 = vadd.f32 %v379_v26, %v2303_v58  ;;  %v259_v46 = vpop.f32.mrf.mxu0  ;;  %v300_v52 = vpop.f32.mrf.mxu1 }
  0xdb   :  { %v2321_v53 = vadd.f32 %v259_v46, %v225_v59  ;;  %v2323_v54 = vadd.f32 %v300_v52, %v226_v55 }
  0xdc   :  { %3009 = vst [vmem:[#allocation54_spill] sm:$0xff] %v2316_v63 }
  0xdd   :  { %3010 = vst [vmem:[#allocation55_spill] sm:$0xff] %v2319_v57 }
  0xde   :  { %3011 = vst [vmem:[#allocation56_spill] sm:$0xff] %v2321_v53 }
  0xdf   :  { %3012 = vst [vmem:[#allocation57_spill] sm:$0xff] %v2323_v54 }
  0xe1   :  { %v341_v50 = vpop.f32.mrf.mxu2  ;;  %v382_v47 = vpop.f32.mrf.mxu3 }
  0xe2   :  { %v2326_v51 = vadd.f32 %v341_v50, %v2301_v39  ;;  %v2329_v49 = vadd.f32 %v382_v47, %v2303_v58  ;;  %v262_v0 = vpop.f32.mrf.mxu0  ;;  %v303_v56 = vpop.f32.mrf.mxu1 }
  0xe3   :  { %v2331_v63 = vadd.f32 %v262_v0, %v225_v59  ;;  %v2333_v26 = vadd.f32 %v303_v56, %v226_v55 }
  0xe4   :  { %3013 = vst [vmem:[#allocation58_spill] sm:$0xff] %v2326_v51 }
  0xe5   :  { %3014 = vst [vmem:[#allocation59_spill] sm:$0xff] %v2329_v49 }
  0xe6   :  { %3015 = vst [vmem:[#allocation60_spill] sm:$0xff] %v2331_v63 }
  0xe7   :  { %3016 = vst [vmem:[#allocation61_spill] sm:$0xff] %v2333_v26 }
  0xe9   :  { %v344_v57 = vpop.f32.mrf.mxu2  ;;  %v385_v48 = vpop.f32.mrf.mxu3 }
  0xea   :  { %v2336_v46 = vadd.f32 %v344_v57, %v2301_v39  ;;  %v2339_v52 = vadd.f32 %v385_v48, %v2303_v58  ;;  %v265_v54 = vpop.f32.mrf.mxu0  ;;  %v306_v50 = vpop.f32.mrf.mxu1 }
  0xeb   :  { %v2341_v51 = vadd.f32 %v265_v54, %v225_v59  ;;  %v2343_v47 = vadd.f32 %v306_v50, %v226_v55 }
  0xec   :  { %3017 = vst [vmem:[#allocation62_spill] sm:$0xff] %v2336_v46 }
  0xed   :  { %3018 = vst [vmem:[#allocation63_spill] sm:$0xff] %v2339_v52 }
  0xee   :  { %3019 = vst [vmem:[#allocation64_spill] sm:$0xff] %v2341_v51  ;;  %v292_v51 = vadd.f32 %v291_v60, %v226_v55 }
  0xef   :  { %3020 = vst [vmem:[#allocation65_spill] sm:$0xff] %v2343_v47 }
  0xf1   :  { %v347_v49 = vpop.f32.mrf.mxu2  ;;  %v388_v53 = vpop.f32.mrf.mxu3 }
  0xf2   :  { %v2346_v0 = vadd.f32 %v347_v49, %v2301_v39  ;;  %v2349_v56 = vadd.f32 %v388_v53, %v2303_v58  ;;  %v268_v26 = vpop.f32.mrf.mxu0  ;;  %v309_v57 = vpop.f32.mrf.mxu1 }
  0xf3   :  { %v2351_v46 = vadd.f32 %v268_v26, %v225_v59  ;;  %v2353_v48 = vadd.f32 %v309_v57, %v226_v55 }
  0xf4   :  { %3021 = vst [vmem:[#allocation66_spill] sm:$0xff] %v2346_v0 }
  0xf5   :  { %3022 = vst [vmem:[#allocation67_spill] sm:$0xff] %v2349_v56  ;;  %v251_v56 = vadd.f32 %v250_v13, %v225_v59 }
  0xf6   :  { %3023 = vst [vmem:[#allocation68_spill] sm:$0xff] %v2351_v46 }
  0xf7   :  { %3024 = vst [vmem:[#allocation69_spill] sm:$0xff] %v2353_v48 }
  0xf9   :  { %v350_v52 = vpop.f32.mrf.mxu2  ;;  %v391_v63 = vpop.f32.mrf.mxu3 }
  0xfa   :  { %v2356_v54 = vadd.f32 %v350_v52, %v2301_v39  ;;  %v2359_v50 = vadd.f32 %v391_v63, %v2303_v58  ;;  %v271_v47 = vpop.f32.mrf.mxu0  ;;  %v312_v49 = vpop.f32.mrf.mxu1 }
  0xfb   :  { %v2361_v0 = vadd.f32 %v271_v47, %v225_v59  ;;  %v2363_v53 = vadd.f32 %v312_v49, %v226_v55  ;;  %v333_v47 = vadd.f32 %v2293_v61, %v2301_v39  ;;  %v374_v55 = vadd.f32 %v2295_v62, %v2303_v58 }
  0xfc   :  { %3025 = vst [vmem:[#allocation70_spill] sm:$0xff] %v2356_v54 }
  0xfd   :  { %3026 = vst [vmem:[#allocation71_spill] sm:$0xff] %v2359_v50 }
  0xfe   :  { %3027 = vst [vmem:[#allocation72_spill] sm:$0xff] %v2361_v0  ;;  %v3053_v0 = vld [vmem:[#allocation47_spill] sm:$0xff] }
  0xff   :  { %3028 = vst [vmem:[#allocation73_spill] sm:$0xff] %v2363_v53  ;;  %v3052_v53 = vld [vmem:[#allocation45_spill] sm:$0xff] }
 0x101   :  { %v353_v26 = vpop.f32.mrf.mxu2  ;;  %v394_v46 = vpop.f32.mrf.mxu3 }
 0x102   :  { %v2366_v57 = vadd.f32 %v353_v26, %v2301_v39  ;;  %v2369_v48 = vadd.f32 %v394_v46, %v2303_v58  ;;  %v514_v52 = vpop.f32.mrf.mxu0  ;;  %v534_v54 = vpop.f32.mrf.mxu1 }
 0x103   :  { %v577_v63 = vadd.f32 %v514_v52, %v251_v56  ;;  %v578_v50 = vadd.f32 %v534_v54, %v292_v51 }
 0x104   :  { %3029 = vst [vmem:[#allocation74_spill] sm:$0xff] %v2366_v57  ;;  %v3051_v57 = vld [vmem:[#allocation44_spill] sm:$0xff] }
 0x105   :  { %3030 = vst [vmem:[#allocation75_spill] sm:$0xff] %v2369_v48  ;;  %v581_v45 = vmul.f32 0.5, %v577_v63  ;;  %v582_v44 = vmul.f32 0.5, %v578_v50 }
 0x107   :  { %1506 = vtanh.f32 %v581_v45 }
 0x108   :  { %1508 = vtanh.f32 %v582_v44 }
 0x109   :  { %v554_v59 = vpop.f32.mrf.mxu2  ;;  %v574_v60 = vpop.f32.mrf.mxu3 }
 0x10a   :  { %v579_v13 = vadd.f32 %v554_v59, %v333_v47  ;;  %v580_v49 = vadd.f32 %v574_v60, %v374_v55  ;;  %v3032_v55 = vld [vmem:[#allocation25_spill] sm:$0xff]  ;;  %v3033_v59 = vld [vmem:[#allocation27_spill] sm:$0xff]  ;;  %v3034_v60 = vld [vmem:[#allocation26_spill] sm:$0xff] }
 0x10c   :  { %v583_v46 = vmul.f32 0.5, %v579_v13  ;;  %1510 = vtanh.f32 %v580_v49  ;;  %v3035_v13 = vld [vmem:[#allocation28_spill] sm:$0xff]  ;;  %v3036_v49 = vld [vmem:[#allocation29_spill] sm:$0xff] }
 0x10d   :  { %v1507_v26 = vpop.eup %1506 }
 0x10e   :  { %v1509_v48 = vpop.eup %1508  ;;  %v587_v56 = vmul.f32 0.5, %v1507_v26  ;;  %1512 = vtanh.f32 %v583_v46  ;;  %v3037_v46 = vld [vmem:[#allocation31_spill] sm:$0xff]  ;;  %v3038_v26 = vld [vmem:[#allocation30_spill] sm:$0xff] }
 0x10f   :  { %v588_v51 = vmul.f32 0.5, %v1509_v48  ;;  %v3031_v48 = vld [vmem:[#allocation24_spill] sm:$0xff] }
 0x110   :  { %v590_v54 = vadd.f32 0.5, %v587_v56  ;;  %v3039_v56 = vld [vmem:[#allocation32_spill] sm:$0xff] }
 0x111   :  { %v591_v45 = vadd.f32 0.5, %v588_v51  ;;  %v3040_v51 = vld [vmem:[#allocation33_spill] sm:$0xff] }
 0x112   :  { %v1511_v50 = vpop.eup %1510 }
 0x113   :  { %v594_v52 = vmul.f32 0.0, %v591_v45  ;;  %v595_v61 = vmul.f32 %v1511_v50, %v590_v54  ;;  %v3041_v54 = vld [vmem:[#allocation35_spill] sm:$0xff]  ;;  %v3042_v45 = vld [vmem:[#allocation34_spill] sm:$0xff]  ;;  %v3043_v50 = vld [vmem:[#allocation36_spill] sm:$0xff] }
 0x114   :  { %v1513_v39 = vpop.eup %1512 }
 0x115   :  { %v2375_v63 = vadd.f32 %v595_v61, %v594_v52  ;;  %v589_v44 = vmul.f32 0.5, %v1513_v39  ;;  %v3044_v52 = vld [vmem:[#allocation37_spill] sm:$0xff]  ;;  %v3045_v61 = vld [vmem:[#allocation39_spill] sm:$0xff]  ;;  %v3046_v39 = vld [vmem:[#allocation38_spill] sm:$0xff] }
 0x117   :  { %1514 = vtanh.f32 %v2375_v63  ;;  %v592_v58 = vadd.f32 0.5, %v589_v44  ;;  %v3047_v44 = vld [vmem:[#allocation40_spill] sm:$0xff] }
 0x11d   :  { %v1515_v62 = vpop.eup %1514 }
 0x11e   :  { %v598_v47 = vmul.f32 %v1515_v62, %v592_v58  ;;  %v3048_v58 = vld [vmem:[#allocation41_spill] sm:$0xff]  ;;  %v3049_v62 = vld [vmem:[#allocation43_spill] sm:$0xff] }
 0x120   :  { %620 = vmatmul.f32.vlgmr.msra.gmra.mxu0 %v598_v47  ;;  %640 = vmatmul.f32.vlgmr.msra.gmra.mxu1 %v598_v47 }
 0x121   :  { %660 = vmatmul.f32.vlgmr.msra.gmra.mxu2 %v598_v47  ;;  %680 = vmatmul.f32.vlgmr.msra.gmra.mxu3 %v598_v47  ;;  %v3050_v47 = vld [vmem:[#allocation42_spill] sm:$0xff] }
 0x122   :  { %818 = vmatpush.msra.mxu0 %v1973_v1  ;;  %838 = vmatpush.msra.mxu1 %v1975_v2 }
 0x123   :  { %858 = vmatpush.msra.mxu2 %v1979_v4  ;;  %878 = vmatpush.msra.mxu3 %v1977_v3 }
 0x124   :  { %819 = vmatpush.msra.mxu0 %v1981_v5  ;;  %839 = vmatpush.msra.mxu1 %v1983_v6 }
 0x125   :  { %859 = vmatpush.msra.mxu2 %v1989_v8  ;;  %879 = vmatpush.msra.mxu3 %v1987_v7 }
 0x126   :  { %820 = vmatpush.msra.mxu0 %v1993_v9  ;;  %840 = vmatpush.msra.mxu1 %v1995_v10 }
 0x127   :  { %860 = vmatpush.msra.mxu2 %v2001_v12  ;;  %880 = vmatpush.msra.mxu3 %v1997_v11 }
 0x128   :  { %821 = vmatpush.msra.mxu0 %v2008_v14  ;;  %841 = vmatpush.msra.mxu1 %v2010_v15 }
 0x129   :  { %861 = vmatpush.msra.mxu2 %v2015_v17  ;;  %881 = vmatpush.msra.mxu3 %v2013_v16 }
 0x12a   :  { %822 = vmatpush.msra.mxu0 %v2017_v18  ;;  %842 = vmatpush.msra.mxu1 %v2019_v19 }
 0x12b   :  { %862 = vmatpush.msra.mxu2 %v2025_v21  ;;  %882 = vmatpush.msra.mxu3 %v2023_v20 }
 0x12c   :  { %823 = vmatpush.msra.mxu0 %v2029_v22  ;;  %843 = vmatpush.msra.mxu1 %v2031_v23 }
 0x12d   :  { %863 = vmatpush.msra.mxu2 %v2037_v25  ;;  %883 = vmatpush.msra.mxu3 %v2035_v24 }
 0x12e   :  { %824 = vmatpush.msra.mxu0 %v2044_v27  ;;  %844 = vmatpush.msra.mxu1 %v2046_v28 }
 0x12f   :  { %864 = vmatpush.msra.mxu2 %v2051_v30  ;;  %884 = vmatpush.msra.mxu3 %v2049_v29 }
 0x130   :  { %825 = vmatpush.msra.mxu0 %v2053_v31  ;;  %845 = vmatpush.msra.mxu1 %v2055_v32 }
 0x131   :  { %865 = vmatpush.msra.mxu2 %v2061_v34  ;;  %885 = vmatpush.msra.mxu3 %v2059_v33 }
 0x132   :  { %826 = vmatpush.msra.mxu0 %v2065_v35  ;;  %846 = vmatpush.msra.mxu1 %v2067_v36 }
 0x133   :  { %866 = vmatpush.msra.mxu2 %v2073_v38  ;;  %886 = vmatpush.msra.mxu3 %v2071_v37 }
 0x134   :  { %827 = vmatpush.msra.mxu0 %v2080_v40  ;;  %847 = vmatpush.msra.mxu1 %v2082_v41 }
 0x135   :  { %867 = vmatpush.msra.mxu2 %v2087_v43  ;;  %887 = vmatpush.msra.mxu3 %v2085_v42 }
 0x136   :  { %828 = vmatpush.msra.mxu0 %v3031_v48  ;;  %848 = vmatpush.msra.mxu1 %v3032_v55 }
 0x137   :  { %868 = vmatpush.msra.mxu2 %v3033_v59  ;;  %888 = vmatpush.msra.mxu3 %v3034_v60 }
 0x138   :  { %829 = vmatpush.msra.mxu0 %v3035_v13  ;;  %849 = vmatpush.msra.mxu1 %v3036_v49 }
 0x139   :  { %869 = vmatpush.msra.mxu2 %v3037_v46  ;;  %889 = vmatpush.msra.mxu3 %v3038_v26  ;;  %v3058_v26 = vld [vmem:[#allocation51_spill] sm:$0xff] }
 0x13a   :  { %830 = vmatpush.msra.mxu0 %v3039_v56  ;;  %850 = vmatpush.msra.mxu1 %v3040_v51  ;;  %v3057_v56 = vld [vmem:[#allocation50_spill] sm:$0xff] }
 0x13b   :  { %870 = vmatpush.msra.mxu2 %v3041_v54  ;;  %890 = vmatpush.msra.mxu3 %v3042_v45  ;;  %v3055_v45 = vld [vmem:[#allocation48_spill] sm:$0xff]  ;;  %v3056_v54 = vld [vmem:[#allocation49_spill] sm:$0xff] }
 0x13c   :  { %831 = vmatpush.msra.mxu0 %v3043_v50  ;;  %851 = vmatpush.msra.mxu1 %v3044_v52  ;;  %v3054_v50 = vld [vmem:[#allocation46_spill] sm:$0xff] }
 0x13d   :  { %871 = vmatpush.msra.mxu2 %v3045_v61  ;;  %891 = vmatpush.msra.mxu3 %v3046_v39 }
 0x13e   :  { %832 = vmatpush.msra.mxu0 %v3047_v44  ;;  %852 = vmatpush.msra.mxu1 %v3048_v58 }
 0x13f   :  { %872 = vmatpush.msra.mxu2 %v3049_v62  ;;  %892 = vmatpush.msra.mxu3 %v3050_v47 }
 0x140   :  { %833 = vmatpush.msra.mxu0 %v3051_v57  ;;  %853 = vmatpush.msra.mxu1 %v3052_v53 }
 0x141   :  { %873 = vmatpush.msra.mxu2 %v3053_v0  ;;  %893 = vmatpush.msra.mxu3 %v3054_v50 }
 0x19d   :  { %v621_v52 = vpop.f32.mrf.mxu0  ;;  %v641_v61 = vpop.f32.mrf.mxu1 }
 0x19e   :  { %v684_v39 = vadd.f32 %v621_v52, %v3055_v45  ;;  %v685_v44 = vadd.f32 %v641_v61, %v3056_v54 }
 0x1a0   :  { %v688_v51 = vmul.f32 0.5, %v684_v39  ;;  %v689_v58 = vmul.f32 0.5, %v685_v44 }
 0x1a2   :  { %1516 = vtanh.f32 %v688_v51 }
 0x1a3   :  { %1518 = vtanh.f32 %v689_v58  ;;  %v2522_v58 = vld [vmem:[#allocation9 + $0x1e0] sm:$0xff] }
 0x1a4   :  { %v661_v62 = vpop.f32.mrf.mxu2  ;;  %v681_v47 = vpop.f32.mrf.mxu3 }
 0x1a5   :  { %v686_v57 = vadd.f32 %v661_v62, %v3057_v56  ;;  %v687_v53 = vadd.f32 %v681_v47, %v3058_v26  ;;  %v2525_v62 = vld [vmem:[#allocation9 + $0x1e8] sm:$0xff]  ;;  %v2528_v47 = vld [vmem:[#allocation9 + $0x1f0] sm:$0xff] }
 0x1a7   :  { %v690_v46 = vmul.f32 0.5, %v686_v57  ;;  %1520 = vtanh.f32 %v687_v53 }
 0x1a8   :  { %v1517_v0 = vpop.eup %1516 }
 0x1a9   :  { %v1519_v50 = vpop.eup %1518  ;;  %v694_v49 = vmul.f32 0.5, %v1517_v0  ;;  %1522 = vtanh.f32 %v690_v46 }
 0x1aa   :  { %v695_v13 = vmul.f32 0.5, %v1519_v50 }
 0x1ab   :  { %v697_v45 = vadd.f32 0.5, %v694_v49 }
 0x1ac   :  { %v698_v52 = vadd.f32 0.5, %v695_v13 }
 0x1ad   :  { %v1521_v54 = vpop.eup %1520 }
 0x1ae   :  { %v701_v61 = vmul.f32 %v698_v52, %v2375_v63  ;;  %v702_v51 = vmul.f32 %v1521_v54, %v697_v45  ;;  %v2531_v45 = vld [vmem:[#allocation9 + $0x1f8] sm:$0xff]  ;;  %v2534_v52 = vld [vmem:[#allocation9 + $0x1c0] sm:$0xff]  ;;  %v2537_v54 = vld [vmem:[#allocation9 + $0x1c8] sm:$0xff] }
 0x1af   :  { %v1523_v39 = vpop.eup %1522 }
 0x1b0   :  { %v2447_v44 = vadd.f32 %v702_v51, %v701_v61  ;;  %v696_v56 = vmul.f32 0.5, %v1523_v39  ;;  %v2540_v61 = vld [vmem:[#allocation9 + $0x1d0] sm:$0xff]  ;;  %v2543_v51 = vld [vmem:[#allocation9 + $0x1d8] sm:$0xff]  ;;  %v2546_v39 = vld [vmem:[#allocation9 + $0x1a0] sm:$0xff] }
 0x1b2   :  { %1524 = vtanh.f32 %v2447_v44  ;;  %v699_v26 = vadd.f32 0.5, %v696_v56  ;;  %v2552_v56 = vld [vmem:[#allocation9 + $0x1b0] sm:$0xff] }
 0x1b8   :  { %v1525_v57 = vpop.eup %1524 }
 0x1b9   :  { %v705_v53 = vmul.f32 %v1525_v57, %v699_v26  ;;  %v2555_v26 = vld [vmem:[#allocation9 + $0x1b8] sm:$0xff]  ;;  %v2558_v57 = vld [vmem:[#allocation9 + $0x180] sm:$0xff] }
 0x1bb   :  { %727 = vmatmul.f32.vlgmr.msrb.gmra.mxu0 %v705_v53  ;;  %747 = vmatmul.f32.vlgmr.msrb.gmra.mxu1 %v705_v53 }
 0x1bc   :  { %767 = vmatmul.f32.vlgmr.msrb.gmra.mxu2 %v705_v53  ;;  %787 = vmatmul.f32.vlgmr.msrb.gmra.mxu3 %v705_v53  ;;  %v2561_v53 = vld [vmem:[#allocation9 + $0x188] sm:$0xff] }
 0x1bd   :  { %925 = vmatpush.msrb.mxu0 %v1973_v1  ;;  %945 = vmatpush.msrb.mxu1 %v1975_v2  ;;  %v3059_v1 = vld [vmem:[#allocation28_spill] sm:$0xff]  ;;  %v3060_v2 = vld [vmem:[#allocation29_spill] sm:$0xff] }
 0x1be   :  { %965 = vmatpush.msrb.mxu2 %v1979_v4  ;;  %985 = vmatpush.msrb.mxu3 %v1977_v3  ;;  %v3061_v3 = vld [vmem:[#allocation31_spill] sm:$0xff]  ;;  %v3062_v4 = vld [vmem:[#allocation30_spill] sm:$0xff] }
 0x1bf   :  { %926 = vmatpush.msrb.mxu0 %v1981_v5  ;;  %946 = vmatpush.msrb.mxu1 %v1983_v6  ;;  %v3063_v5 = vld [vmem:[#allocation32_spill] sm:$0xff]  ;;  %v3064_v6 = vld [vmem:[#allocation33_spill] sm:$0xff] }
 0x1c0   :  { %966 = vmatpush.msrb.mxu2 %v1989_v8  ;;  %986 = vmatpush.msrb.mxu3 %v1987_v7  ;;  %v3065_v7 = vld [vmem:[#allocation35_spill] sm:$0xff]  ;;  %v3066_v8 = vld [vmem:[#allocation34_spill] sm:$0xff] }
 0x1c1   :  { %927 = vmatpush.msrb.mxu0 %v1993_v9  ;;  %947 = vmatpush.msrb.mxu1 %v1995_v10  ;;  %v3067_v9 = vld [vmem:[#allocation36_spill] sm:$0xff]  ;;  %v3068_v10 = vld [vmem:[#allocation37_spill] sm:$0xff] }
 0x1c2   :  { %967 = vmatpush.msrb.mxu2 %v2001_v12  ;;  %987 = vmatpush.msrb.mxu3 %v1997_v11  ;;  %v3069_v11 = vld [vmem:[#allocation39_spill] sm:$0xff]  ;;  %v3070_v12 = vld [vmem:[#allocation38_spill] sm:$0xff] }
 0x1c3   :  { %928 = vmatpush.msrb.mxu0 %v2008_v14  ;;  %948 = vmatpush.msrb.mxu1 %v2010_v15  ;;  %v3071_v14 = vld [vmem:[#allocation40_spill] sm:$0xff]  ;;  %v3072_v15 = vld [vmem:[#allocation41_spill] sm:$0xff] }
 0x1c4   :  { %968 = vmatpush.msrb.mxu2 %v2015_v17  ;;  %988 = vmatpush.msrb.mxu3 %v2013_v16  ;;  %v3073_v16 = vld [vmem:[#allocation43_spill] sm:$0xff]  ;;  %v3074_v17 = vld [vmem:[#allocation42_spill] sm:$0xff] }
 0x1c5   :  { %929 = vmatpush.msrb.mxu0 %v2017_v18  ;;  %949 = vmatpush.msrb.mxu1 %v2019_v19  ;;  %v3075_v18 = vld [vmem:[#allocation44_spill] sm:$0xff]  ;;  %v3076_v19 = vld [vmem:[#allocation45_spill] sm:$0xff] }
 0x1c6   :  { %969 = vmatpush.msrb.mxu2 %v2025_v21  ;;  %989 = vmatpush.msrb.mxu3 %v2023_v20  ;;  %v3077_v20 = vld [vmem:[#allocation47_spill] sm:$0xff]  ;;  %v3078_v21 = vld [vmem:[#allocation46_spill] sm:$0xff] }
 0x1c7   :  { %930 = vmatpush.msrb.mxu0 %v2029_v22  ;;  %950 = vmatpush.msrb.mxu1 %v2031_v23 }
 0x1c8   :  { %970 = vmatpush.msrb.mxu2 %v2037_v25  ;;  %990 = vmatpush.msrb.mxu3 %v2035_v24  ;;  %v3079_v24 = vld [vmem:[#allocation52_spill] sm:$0xff] }
 0x1c9   :  { %931 = vmatpush.msrb.mxu0 %v2044_v27  ;;  %951 = vmatpush.msrb.mxu1 %v2046_v28  ;;  %v3080_v27 = vld [vmem:[#allocation53_spill] sm:$0xff] }
 0x1ca   :  { %971 = vmatpush.msrb.mxu2 %v2051_v30  ;;  %991 = vmatpush.msrb.mxu3 %v2049_v29 }
 0x1cb   :  { %932 = vmatpush.msrb.mxu0 %v2053_v31  ;;  %952 = vmatpush.msrb.mxu1 %v2055_v32 }
 0x1cc   :  { %972 = vmatpush.msrb.mxu2 %v2061_v34  ;;  %992 = vmatpush.msrb.mxu3 %v2059_v33  ;;  %v3081_v33 = vld [vmem:[#allocation54_spill] sm:$0xff] }
 0x1cd   :  { %933 = vmatpush.msrb.mxu0 %v2065_v35  ;;  %953 = vmatpush.msrb.mxu1 %v2067_v36  ;;  %v3082_v35 = vld [vmem:[#allocation55_spill] sm:$0xff] }
 0x1ce   :  { %973 = vmatpush.msrb.mxu2 %v2073_v38  ;;  %993 = vmatpush.msrb.mxu3 %v2071_v37 }
 0x1cf   :  { %934 = vmatpush.msrb.mxu0 %v2080_v40  ;;  %954 = vmatpush.msrb.mxu1 %v2082_v41 }
 0x1d0   :  { %974 = vmatpush.msrb.mxu2 %v2087_v43  ;;  %994 = vmatpush.msrb.mxu3 %v2085_v42 }
 0x1d1   :  { %935 = vmatpush.msrb.mxu0 %v3031_v48  ;;  %955 = vmatpush.msrb.mxu1 %v3032_v55 }
 0x1d2   :  { %975 = vmatpush.msrb.mxu2 %v3033_v59  ;;  %995 = vmatpush.msrb.mxu3 %v3034_v60 }
 0x1d3   :  { %936 = vmatpush.msrb.mxu0 %v3059_v1  ;;  %956 = vmatpush.msrb.mxu1 %v3060_v2  ;;  %v2564_v1 = vld [vmem:[#allocation9 + $0x190] sm:$0xff]  ;;  %v2567_v2 = vld [vmem:[#allocation9 + $0x198] sm:$0xff] }
 0x1d4   :  { %976 = vmatpush.msrb.mxu2 %v3061_v3  ;;  %996 = vmatpush.msrb.mxu3 %v3062_v4  ;;  %v2570_v3 = vld [vmem:[#allocation9 + $0x160] sm:$0xff]  ;;  %v2573_v4 = vld [vmem:[#allocation9 + $0x168] sm:$0xff] }
 0x1d5   :  { %937 = vmatpush.msrb.mxu0 %v3063_v5  ;;  %957 = vmatpush.msrb.mxu1 %v3064_v6  ;;  %v2576_v5 = vld [vmem:[#allocation9 + $0x170] sm:$0xff]  ;;  %v2579_v6 = vld [vmem:[#allocation9 + $0x178] sm:$0xff] }
 0x1d6   :  { %977 = vmatpush.msrb.mxu2 %v3065_v7  ;;  %997 = vmatpush.msrb.mxu3 %v3066_v8  ;;  %v2582_v7 = vld [vmem:[#allocation9 + $0x140] sm:$0xff]  ;;  %v2585_v8 = vld [vmem:[#allocation9 + $0x148] sm:$0xff] }
 0x1d7   :  { %938 = vmatpush.msrb.mxu0 %v3067_v9  ;;  %958 = vmatpush.msrb.mxu1 %v3068_v10  ;;  %v2588_v9 = vld [vmem:[#allocation9 + $0x150] sm:$0xff]  ;;  %v2591_v10 = vld [vmem:[#allocation9 + $0x158] sm:$0xff] }
 0x1d8   :  { %978 = vmatpush.msrb.mxu2 %v3069_v11  ;;  %998 = vmatpush.msrb.mxu3 %v3070_v12  ;;  %v2594_v11 = vld [vmem:[#allocation9 + $0x120] sm:$0xff]  ;;  %v2597_v12 = vld [vmem:[#allocation9 + $0x128] sm:$0xff] }
 0x1d9   :  { %939 = vmatpush.msrb.mxu0 %v3071_v14  ;;  %959 = vmatpush.msrb.mxu1 %v3072_v15  ;;  %v2600_v14 = vld [vmem:[#allocation9 + $0x130] sm:$0xff]  ;;  %v2603_v15 = vld [vmem:[#allocation9 + $0x138] sm:$0xff] }
 0x1da   :  { %979 = vmatpush.msrb.mxu2 %v3073_v16  ;;  %999 = vmatpush.msrb.mxu3 %v3074_v17  ;;  %v2606_v16 = vld [vmem:[#allocation9 + $0x100] sm:$0xff]  ;;  %v2609_v17 = vld [vmem:[#allocation9 + $0x108] sm:$0xff] }
 0x1db   :  { %940 = vmatpush.msrb.mxu0 %v3075_v18  ;;  %960 = vmatpush.msrb.mxu1 %v3076_v19  ;;  %v2612_v18 = vld [vmem:[#allocation9 + $0x110] sm:$0xff]  ;;  %v2615_v19 = vld [vmem:[#allocation9 + $0x118] sm:$0xff] }
 0x1dc   :  { %980 = vmatpush.msrb.mxu2 %v3077_v20  ;;  %1000 = vmatpush.msrb.mxu3 %v3078_v21  ;;  %v2618_v20 = vld [vmem:[#allocation9 + $0xe0] sm:$0xff]  ;;  %v2621_v21 = vld [vmem:[#allocation9 + $0xe8] sm:$0xff] }
 0x238   :  { %v728_v22 = vpop.f32.mrf.mxu0  ;;  %v748_v23 = vpop.f32.mrf.mxu1 }
 0x239   :  { %v791_v25 = vadd.f32 %v728_v22, %v3079_v24  ;;  %v792_v28 = vadd.f32 %v748_v23, %v3080_v27  ;;  %v2624_v22 = vld [vmem:[#allocation9 + $0xf0] sm:$0xff]  ;;  %v2627_v23 = vld [vmem:[#allocation9 + $0xf8] sm:$0xff]  ;;  %v2630_v24 = vld [vmem:[#allocation9 + $0xc0] sm:$0xff] }
 0x23a   :  { %v2636_v27 = vld [vmem:[#allocation9 + $0xd0] sm:$0xff] }
 0x23b   :  { %v795_v29 = vmul.f32 0.5, %v791_v25  ;;  %v796_v30 = vmul.f32 0.5, %v792_v28  ;;  %v2633_v25 = vld [vmem:[#allocation9 + $0xc8] sm:$0xff]  ;;  %v2639_v28 = vld [vmem:[#allocation9 + $0xd8] sm:$0xff] }
 0x23d   :  { %1526 = vtanh.f32 %v795_v29  ;;  %v2642_v29 = vld [vmem:[#allocation9 + $0xa0] sm:$0xff] }
 0x23e   :  { %1528 = vtanh.f32 %v796_v30  ;;  %v2645_v30 = vld [vmem:[#allocation9 + $0xa8] sm:$0xff] }
 0x23f   :  { %v768_v31 = vpop.f32.mrf.mxu2  ;;  %v788_v32 = vpop.f32.mrf.mxu3 }
 0x240   :  { %v793_v34 = vadd.f32 %v768_v31, %v3081_v33  ;;  %v794_v36 = vadd.f32 %v788_v32, %v3082_v35  ;;  %v2648_v31 = vld [vmem:[#allocation9 + $0xb0] sm:$0xff]  ;;  %v2651_v32 = vld [vmem:[#allocation9 + $0xb8] sm:$0xff]  ;;  %v2654_v33 = vld [vmem:[#allocation9 + $0x80] sm:$0xff] }
 0x241   :  { %3083 = vst [vmem:[#allocation24_spill] sm:$0xff] %v2654_v33  ;;  %v2660_v35 = vld [vmem:[#allocation9 + $0x90] sm:$0xff] }
 0x242   :  { %v797_v37 = vmul.f32 0.5, %v793_v34  ;;  %1530 = vtanh.f32 %v794_v36  ;;  %v2657_v34 = vld [vmem:[#allocation9 + $0x88] sm:$0xff]  ;;  %3085 = vst [vmem:[#allocation27_spill] sm:$0xff] %v2660_v35  ;;  %v2663_v36 = vld [vmem:[#allocation9 + $0x98] sm:$0xff] }
 0x243   :  { %v1527_v38 = vpop.eup %1526  ;;  %3084 = vst [vmem:[#allocation25_spill] sm:$0xff] %v2657_v34 }
 0x244   :  { %v1529_v40 = vpop.eup %1528  ;;  %v801_v41 = vmul.f32 0.5, %v1527_v38  ;;  %1532 = vtanh.f32 %v797_v37  ;;  %3086 = vst [vmem:[#allocation26_spill] sm:$0xff] %v2663_v36  ;;  %v2666_v37 = vld [vmem:[#allocation9 + $0x60] sm:$0xff]  ;;  %v2669_v38 = vld [vmem:[#allocation9 + $0x68] sm:$0xff] }
 0x245   :  { %v802_v42 = vmul.f32 0.5, %v1529_v40  ;;  %3087 = vst [vmem:[#allocation48_spill] sm:$0xff] %v2666_v37  ;;  %v2672_v40 = vld [vmem:[#allocation9 + $0x70] sm:$0xff] }
 0x246   :  { %v804_v43 = vadd.f32 0.5, %v801_v41  ;;  %3088 = vst [vmem:[#allocation49_spill] sm:$0xff] %v2669_v38  ;;  %v2675_v41 = vld [vmem:[#allocation9 + $0x78] sm:$0xff] }
 0x247   :  { %v805_v0 = vadd.f32 0.5, %v802_v42  ;;  %3089 = vst [vmem:[#allocation50_spill] sm:$0xff] %v2672_v40  ;;  %v2678_v42 = vld [vmem:[#allocation9 + $0x40] sm:$0xff] }
 0x248   :  { %v1531_v63 = vpop.eup %1530  ;;  %3090 = vst [vmem:[#allocation51_spill] sm:$0xff] %v2675_v41 }
 0x249   :  { %v808_v48 = vmul.f32 %v805_v0, %v2447_v44  ;;  %v809_v55 = vmul.f32 %v1531_v63, %v804_v43  ;;  %v2549_v44 = vld [vmem:[#allocation9 + $0x1a8] sm:$0xff]  ;;  %3091 = vst [vmem:[#allocation28_spill] sm:$0xff] %v2678_v42  ;;  %v2684_v0 = vld [vmem:[#allocation9 + $0x50] sm:$0xff]  ;;  %v2687_v63 = vld [vmem:[#allocation9 + $0x58] sm:$0xff] }
 0x24a   :  { %v1533_v59 = vpop.eup %1532  ;;  %v2681_v43 = vld [vmem:[#allocation9 + $0x48] sm:$0xff]  ;;  %3093 = vst [vmem:[#allocation31_spill] sm:$0xff] %v2684_v0 }
 0x24b   :  { %v2519_v60 = vadd.f32 %v809_v55, %v808_v48  ;;  %v803_v13 = vmul.f32 0.5, %v1533_v59  ;;  %3092 = vst [vmem:[#allocation29_spill] sm:$0xff] %v2681_v43  ;;  %v2690_v48 = vld [vmem:[#allocation9 + $0x20] sm:$0xff]  ;;  %v2693_v55 = vld [vmem:[#allocation9 + $0x28] sm:$0xff]  ;;  %v2696_v59 = vld [vmem:[#allocation9 + $0x30] sm:$0xff] }
 0x24c   :  { %3094 = vst [vmem:[#allocation30_spill] sm:$0xff] %v2687_v63 }
 0x24d   :  { %1534 = vtanh.f32 %v2519_v60  ;;  %v806_v49 = vadd.f32 0.5, %v803_v13  ;;  %3095 = vst [vmem:[#allocation32_spill] sm:$0xff] %v2690_v48  ;;  %v2699_v13 = vld [vmem:[#allocation9 + $0x38] sm:$0xff] }
 0x24e   :  { %3096 = vst [vmem:[#allocation33_spill] sm:$0xff] %v2693_v55 }
 0x24f   :  { %3097 = vst [vmem:[#allocation35_spill] sm:$0xff] %v2696_v59 }
 0x250   :  { %3098 = vst [vmem:[#allocation34_spill] sm:$0xff] %v2699_v13 }
 0x253   :  { %v1535_v46 = vpop.eup %1534 }
 0x254   :  { %v812_v50 = vmul.f32 %v1535_v46, %v806_v49  ;;  %v2702_v49 = vld [vmem:[#allocation9] sm:$0xff]  ;;  %v2705_v46 = vld [vmem:[#allocation9 + $0x8] sm:$0xff] }
 0x255   :  { %3099 = vst [vmem:[#allocation36_spill] sm:$0xff] %v2702_v49 }
 0x256   :  { %834 = vmatmul.f32.vlgmr.msra.gmra.mxu0 %v812_v50  ;;  %854 = vmatmul.f32.vlgmr.msra.gmra.mxu1 %v812_v50  ;;  %3100 = vst [vmem:[#allocation37_spill] sm:$0xff] %v2705_v46 }
 0x257   :  { %874 = vmatmul.f32.vlgmr.msra.gmra.mxu2 %v812_v50  ;;  %894 = vmatmul.f32.vlgmr.msra.gmra.mxu3 %v812_v50  ;;  %v2708_v50 = vld [vmem:[#allocation9 + $0x10] sm:$0xff] }
 0x258   :  { %1032 = vmatpush.msra.mxu0 %v2522_v58  ;;  %1052 = vmatpush.msra.mxu1 %v2525_v62  ;;  %3101 = vst [vmem:[#allocation39_spill] sm:$0xff] %v2708_v50 }
 0x259   :  { %1072 = vmatpush.msra.mxu2 %v2528_v47  ;;  %1092 = vmatpush.msra.mxu3 %v2531_v45 }
 0x25a   :  { %1033 = vmatpush.msra.mxu0 %v2534_v52  ;;  %1053 = vmatpush.msra.mxu1 %v2537_v54 }
 0x25b   :  { %1073 = vmatpush.msra.mxu2 %v2540_v61  ;;  %1093 = vmatpush.msra.mxu3 %v2543_v51 }
 0x25c   :  { %1034 = vmatpush.msra.mxu0 %v2546_v39  ;;  %1054 = vmatpush.msra.mxu1 %v2549_v44 }
 0x25d   :  { %1074 = vmatpush.msra.mxu2 %v2552_v56  ;;  %1094 = vmatpush.msra.mxu3 %v2555_v26 }
 0x25e   :  { %1035 = vmatpush.msra.mxu0 %v2558_v57  ;;  %1055 = vmatpush.msra.mxu1 %v2561_v53 }
 0x25f   :  { %1075 = vmatpush.msra.mxu2 %v2564_v1  ;;  %1095 = vmatpush.msra.mxu3 %v2567_v2 }
 0x260   :  { %1036 = vmatpush.msra.mxu0 %v2570_v3  ;;  %1056 = vmatpush.msra.mxu1 %v2573_v4 }
 0x261   :  { %1076 = vmatpush.msra.mxu2 %v2576_v5  ;;  %1096 = vmatpush.msra.mxu3 %v2579_v6 }
 0x262   :  { %1037 = vmatpush.msra.mxu0 %v2582_v7  ;;  %1057 = vmatpush.msra.mxu1 %v2585_v8 }
 0x263   :  { %1077 = vmatpush.msra.mxu2 %v2588_v9  ;;  %1097 = vmatpush.msra.mxu3 %v2591_v10 }
 0x264   :  { %1038 = vmatpush.msra.mxu0 %v2594_v11  ;;  %1058 = vmatpush.msra.mxu1 %v2597_v12 }
 0x265   :  { %1078 = vmatpush.msra.mxu2 %v2600_v14  ;;  %1098 = vmatpush.msra.mxu3 %v2603_v15 }
 0x266   :  { %1039 = vmatpush.msra.mxu0 %v2606_v16  ;;  %1059 = vmatpush.msra.mxu1 %v2609_v17 }
 0x267   :  { %1079 = vmatpush.msra.mxu2 %v2612_v18  ;;  %1099 = vmatpush.msra.mxu3 %v2615_v19 }
 0x268   :  { %1040 = vmatpush.msra.mxu0 %v2618_v20  ;;  %1060 = vmatpush.msra.mxu1 %v2621_v21 }
 0x269   :  { %1080 = vmatpush.msra.mxu2 %v2624_v22  ;;  %1100 = vmatpush.msra.mxu3 %v2627_v23 }
 0x26a   :  { %1041 = vmatpush.msra.mxu0 %v2630_v24  ;;  %1061 = vmatpush.msra.mxu1 %v2633_v25 }
 0x26b   :  { %1081 = vmatpush.msra.mxu2 %v2636_v27  ;;  %1101 = vmatpush.msra.mxu3 %v2639_v28 }
 0x26c   :  { %1042 = vmatpush.msra.mxu0 %v2642_v29  ;;  %1062 = vmatpush.msra.mxu1 %v2645_v30 }
 0x26d   :  { %1082 = vmatpush.msra.mxu2 %v2648_v31  ;;  %1102 = vmatpush.msra.mxu3 %v2651_v32 }
 0x26e   :  { %1043 = vmatpush.msra.mxu0 %v2654_v33  ;;  %1063 = vmatpush.msra.mxu1 %v2657_v34 }
 0x26f   :  { %1083 = vmatpush.msra.mxu2 %v2660_v35  ;;  %1103 = vmatpush.msra.mxu3 %v2663_v36 }
 0x270   :  { %1044 = vmatpush.msra.mxu0 %v2666_v37  ;;  %1064 = vmatpush.msra.mxu1 %v2669_v38  ;;  %v3106_v37 = vld [vmem:[#allocation59_spill] sm:$0xff] }
 0x271   :  { %1084 = vmatpush.msra.mxu2 %v2672_v40  ;;  %1104 = vmatpush.msra.mxu3 %v2675_v41  ;;  %v3105_v40 = vld [vmem:[#allocation58_spill] sm:$0xff] }
 0x272   :  { %1045 = vmatpush.msra.mxu0 %v2678_v42  ;;  %1065 = vmatpush.msra.mxu1 %v2681_v43 }
 0x273   :  { %1085 = vmatpush.msra.mxu2 %v2684_v0  ;;  %1105 = vmatpush.msra.mxu3 %v2687_v63  ;;  %v3103_v63 = vld [vmem:[#allocation56_spill] sm:$0xff]  ;;  %v3104_v0 = vld [vmem:[#allocation57_spill] sm:$0xff] }
 0x274   :  { %1046 = vmatpush.msra.mxu0 %v2690_v48  ;;  %1066 = vmatpush.msra.mxu1 %v2693_v55  ;;  %v2711_v55 = vld [vmem:[#allocation9 + $0x18] sm:$0xff] }
 0x275   :  { %1086 = vmatpush.msra.mxu2 %v2696_v59  ;;  %1106 = vmatpush.msra.mxu3 %v2699_v13  ;;  %3102 = vst [vmem:[#allocation38_spill] sm:$0xff] %v2711_v55 }
 0x276   :  { %1047 = vmatpush.msra.mxu0 %v2702_v49  ;;  %1067 = vmatpush.msra.mxu1 %v2705_v46 }
 0x277   :  { %1087 = vmatpush.msra.mxu2 %v2708_v50  ;;  %1107 = vmatpush.msra.mxu3 %v2711_v55 }
 0x2d3   :  { %v835_v59 = vpop.f32.mrf.mxu0  ;;  %v855_v48 = vpop.f32.mrf.mxu1 }
 0x2d4   :  { %v898_v13 = vadd.f32 %v835_v59, %v3103_v63  ;;  %v899_v43 = vadd.f32 %v855_v48, %v3104_v0 }
 0x2d6   :  { %v902_v42 = vmul.f32 0.5, %v898_v13  ;;  %v903_v49 = vmul.f32 0.5, %v899_v43 }
 0x2d8   :  { %1536 = vtanh.f32 %v902_v42 }
 0x2d9   :  { %1538 = vtanh.f32 %v903_v49  ;;  %v3113_v49 = vld [vmem:[#allocation50_spill] sm:$0xff] }
 0x2da   :  { %v875_v41 = vpop.f32.mrf.mxu2  ;;  %v895_v46 = vpop.f32.mrf.mxu3 }
 0x2db   :  { %v900_v38 = vadd.f32 %v875_v41, %v3105_v40  ;;  %v901_v50 = vadd.f32 %v895_v46, %v3106_v37  ;;  %v3114_v46 = vld [vmem:[#allocation51_spill] sm:$0xff] }
 0x2dd   :  { %v904_v36 = vmul.f32 0.5, %v900_v38  ;;  %1540 = vtanh.f32 %v901_v50  ;;  %v3115_v50 = vld [vmem:[#allocation28_spill] sm:$0xff] }
 0x2de   :  { %v1537_v35 = vpop.eup %1536 }
 0x2df   :  { %v1539_v55 = vpop.eup %1538  ;;  %v908_v34 = vmul.f32 0.5, %v1537_v35  ;;  %1542 = vtanh.f32 %v904_v36  ;;  %v3110_v35 = vld [vmem:[#allocation26_spill] sm:$0xff]  ;;  %v3111_v36 = vld [vmem:[#allocation48_spill] sm:$0xff] }
 0x2e0   :  { %v909_v33 = vmul.f32 0.5, %v1539_v55  ;;  %v3112_v55 = vld [vmem:[#allocation49_spill] sm:$0xff] }
 0x2e1   :  { %v911_v63 = vadd.f32 0.5, %v908_v34  ;;  %v3109_v34 = vld [vmem:[#allocation27_spill] sm:$0xff] }
 0x2e2   :  { %v912_v59 = vadd.f32 0.5, %v909_v33  ;;  %v3108_v33 = vld [vmem:[#allocation25_spill] sm:$0xff] }
 0x2e3   :  { %v1541_v0 = vpop.eup %1540 }
 0x2e4   :  { %v915_v43 = vmul.f32 %v912_v59, %v2519_v60  ;;  %v916_v42 = vmul.f32 %v1541_v0, %v911_v63  ;;  %v3107_v60 = vld [vmem:[#allocation24_spill] sm:$0xff]  ;;  %v3116_v63 = vld [vmem:[#allocation29_spill] sm:$0xff]  ;;  %v3117_v59 = vld [vmem:[#allocation31_spill] sm:$0xff] }
 0x2e5   :  { %v1543_v48 = vpop.eup %1542  ;;  %v3118_v0 = vld [vmem:[#allocation30_spill] sm:$0xff] }
 0x2e6   :  { %v2719_v13 = vadd.f32 %v916_v42, %v915_v43  ;;  %v910_v40 = vmul.f32 0.5, %v1543_v48  ;;  %v3119_v43 = vld [vmem:[#allocation32_spill] sm:$0xff]  ;;  %v3120_v42 = vld [vmem:[#allocation33_spill] sm:$0xff]  ;;  %v3121_v48 = vld [vmem:[#allocation35_spill] sm:$0xff] }
 0x2e8   :  { %1544 = vtanh.f32 %v2719_v13  ;;  %v913_v37 = vadd.f32 0.5, %v910_v40  ;;  %v3122_v40 = vld [vmem:[#allocation34_spill] sm:$0xff] }
 0x2ee   :  { %v1545_v38 = vpop.eup %1544 }
 0x2ef   :  { %v919_v41 = vmul.f32 %v1545_v38, %v913_v37  ;;  %v3123_v37 = vld [vmem:[#allocation36_spill] sm:$0xff]  ;;  %v3124_v38 = vld [vmem:[#allocation37_spill] sm:$0xff] }
 0x2f1   :  { %941 = vmatmul.f32.vlgmr.msrb.gmra.mxu0 %v919_v41  ;;  %961 = vmatmul.f32.vlgmr.msrb.gmra.mxu1 %v919_v41 }
 0x2f2   :  { %981 = vmatmul.f32.vlgmr.msrb.gmra.mxu2 %v919_v41  ;;  %1001 = vmatmul.f32.vlgmr.msrb.gmra.mxu3 %v919_v41  ;;  %v3125_v41 = vld [vmem:[#allocation39_spill] sm:$0xff] }
 0x2f3   :  { %1139 = vmatpush.msrb.mxu0 %v2522_v58  ;;  %1159 = vmatpush.msrb.mxu1 %v2525_v62 }
 0x2f4   :  { %1179 = vmatpush.msrb.mxu2 %v2528_v47  ;;  %1199 = vmatpush.msrb.mxu3 %v2531_v45 }
 0x2f5   :  { %1140 = vmatpush.msrb.mxu0 %v2534_v52  ;;  %1160 = vmatpush.msrb.mxu1 %v2537_v54 }
 0x2f6   :  { %1180 = vmatpush.msrb.mxu2 %v2540_v61  ;;  %1200 = vmatpush.msrb.mxu3 %v2543_v51 }
 0x2f7   :  { %1141 = vmatpush.msrb.mxu0 %v2546_v39  ;;  %1161 = vmatpush.msrb.mxu1 %v2549_v44 }
 0x2f8   :  { %1181 = vmatpush.msrb.mxu2 %v2552_v56  ;;  %1201 = vmatpush.msrb.mxu3 %v2555_v26 }
 0x2f9   :  { %1142 = vmatpush.msrb.mxu0 %v2558_v57  ;;  %1162 = vmatpush.msrb.mxu1 %v2561_v53 }
 0x2fa   :  { %1182 = vmatpush.msrb.mxu2 %v2564_v1  ;;  %1202 = vmatpush.msrb.mxu3 %v2567_v2 }
 0x2fb   :  { %1143 = vmatpush.msrb.mxu0 %v2570_v3  ;;  %1163 = vmatpush.msrb.mxu1 %v2573_v4 }
 0x2fc   :  { %1183 = vmatpush.msrb.mxu2 %v2576_v5  ;;  %1203 = vmatpush.msrb.mxu3 %v2579_v6 }
 0x2fd   :  { %1144 = vmatpush.msrb.mxu0 %v2582_v7  ;;  %1164 = vmatpush.msrb.mxu1 %v2585_v8 }
 0x2fe   :  { %1184 = vmatpush.msrb.mxu2 %v2588_v9  ;;  %1204 = vmatpush.msrb.mxu3 %v2591_v10 }
 0x2ff   :  { %1145 = vmatpush.msrb.mxu0 %v2594_v11  ;;  %1165 = vmatpush.msrb.mxu1 %v2597_v12 }
 0x300   :  { %1185 = vmatpush.msrb.mxu2 %v2600_v14  ;;  %1205 = vmatpush.msrb.mxu3 %v2603_v15 }
 0x301   :  { %1146 = vmatpush.msrb.mxu0 %v2606_v16  ;;  %1166 = vmatpush.msrb.mxu1 %v2609_v17 }
 0x302   :  { %1186 = vmatpush.msrb.mxu2 %v2612_v18  ;;  %1206 = vmatpush.msrb.mxu3 %v2615_v19 }
 0x303   :  { %1147 = vmatpush.msrb.mxu0 %v2618_v20  ;;  %1167 = vmatpush.msrb.mxu1 %v2621_v21 }
 0x304   :  { %1187 = vmatpush.msrb.mxu2 %v2624_v22  ;;  %1207 = vmatpush.msrb.mxu3 %v2627_v23 }
 0x305   :  { %1148 = vmatpush.msrb.mxu0 %v2630_v24  ;;  %1168 = vmatpush.msrb.mxu1 %v2633_v25 }
 0x306   :  { %1188 = vmatpush.msrb.mxu2 %v2636_v27  ;;  %1208 = vmatpush.msrb.mxu3 %v2639_v28 }
 0x307   :  { %1149 = vmatpush.msrb.mxu0 %v2642_v29  ;;  %1169 = vmatpush.msrb.mxu1 %v2645_v30 }
 0x308   :  { %1189 = vmatpush.msrb.mxu2 %v2648_v31  ;;  %1209 = vmatpush.msrb.mxu3 %v2651_v32 }
 0x309   :  { %1150 = vmatpush.msrb.mxu0 %v3107_v60  ;;  %1170 = vmatpush.msrb.mxu1 %v3108_v33 }
 0x30a   :  { %1190 = vmatpush.msrb.mxu2 %v3109_v34  ;;  %1210 = vmatpush.msrb.mxu3 %v3110_v35  ;;  %v3130_v35 = vld [vmem:[#allocation63_spill] sm:$0xff] }
 0x30b   :  { %1151 = vmatpush.msrb.mxu0 %v3111_v36  ;;  %1171 = vmatpush.msrb.mxu1 %v3112_v55  ;;  %v3129_v36 = vld [vmem:[#allocation62_spill] sm:$0xff] }
 0x30c   :  { %1191 = vmatpush.msrb.mxu2 %v3113_v49  ;;  %1211 = vmatpush.msrb.mxu3 %v3114_v46  ;;  %v3127_v46 = vld [vmem:[#allocation60_spill] sm:$0xff]  ;;  %v3128_v49 = vld [vmem:[#allocation61_spill] sm:$0xff] }
 0x30d   :  { %1152 = vmatpush.msrb.mxu0 %v3115_v50  ;;  %1172 = vmatpush.msrb.mxu1 %v3116_v63  ;;  %v3126_v50 = vld [vmem:[#allocation38_spill] sm:$0xff] }
 0x30e   :  { %1192 = vmatpush.msrb.mxu2 %v3117_v59  ;;  %1212 = vmatpush.msrb.mxu3 %v3118_v0 }
 0x30f   :  { %1153 = vmatpush.msrb.mxu0 %v3119_v43  ;;  %1173 = vmatpush.msrb.mxu1 %v3120_v42 }
 0x310   :  { %1193 = vmatpush.msrb.mxu2 %v3121_v48  ;;  %1213 = vmatpush.msrb.mxu3 %v3122_v40 }
 0x311   :  { %1154 = vmatpush.msrb.mxu0 %v3123_v37  ;;  %1174 = vmatpush.msrb.mxu1 %v3124_v38 }
 0x312   :  { %1194 = vmatpush.msrb.mxu2 %v3125_v41  ;;  %1214 = vmatpush.msrb.mxu3 %v3126_v50 }
 0x36e   :  { %v942_v63 = vpop.f32.mrf.mxu0  ;;  %v962_v59 = vpop.f32.mrf.mxu1 }
 0x36f   :  { %v1005_v0 = vadd.f32 %v942_v63, %v3127_v46  ;;  %v1006_v43 = vadd.f32 %v962_v59, %v3128_v49 }
 0x371   :  { %v1009_v55 = vmul.f32 0.5, %v1005_v0  ;;  %v1010_v42 = vmul.f32 0.5, %v1006_v43 }
 0x373   :  { %1546 = vtanh.f32 %v1009_v55 }
 0x374   :  { %1548 = vtanh.f32 %v1010_v42 }
 0x375   :  { %v982_v48 = vpop.f32.mrf.mxu2  ;;  %v1002_v40 = vpop.f32.mrf.mxu3 }
 0x376   :  { %v1007_v37 = vadd.f32 %v982_v48, %v3129_v36  ;;  %v1008_v38 = vadd.f32 %v1002_v40, %v3130_v35 }
 0x378   :  { %v1011_v34 = vmul.f32 0.5, %v1007_v37  ;;  %1550 = vtanh.f32 %v1008_v38  ;;  %v1368_v37 = vld [vmem:[#allocation11 + $0x78] sm:$0xff] }
 0x379   :  { %v1547_v41 = vpop.eup %1546 }
 0x37a   :  { %v1549_v50 = vpop.eup %1548  ;;  %v1015_v33 = vmul.f32 0.5, %v1547_v41  ;;  %1552 = vtanh.f32 %v1011_v34 }
 0x37b   :  { %v1016_v60 = vmul.f32 0.5, %v1549_v50 }
 0x37c   :  { %v1018_v46 = vadd.f32 0.5, %v1015_v33 }
 0x37d   :  { %v1019_v63 = vadd.f32 0.5, %v1016_v60 }
 0x37e   :  { %v1551_v49 = vpop.eup %1550 }
 0x37f   :  { %v1022_v59 = vmul.f32 %v1019_v63, %v2719_v13  ;;  %v1023_v55 = vmul.f32 %v1551_v49, %v1018_v46  ;;  %v3155_v46 = vld [vmem:[#allocation68_spill] sm:$0xff]  ;;  %v3156_v49 = vld [vmem:[#allocation69_spill] sm:$0xff] }
 0x380   :  { %v1553_v0 = vpop.eup %1552 }
 0x381   :  { %v2791_v43 = vadd.f32 %v1023_v55, %v1022_v59  ;;  %v1017_v36 = vmul.f32 0.5, %v1553_v0 }
 0x383   :  { %1554 = vtanh.f32 %v2791_v43  ;;  %v1020_v35 = vadd.f32 0.5, %v1017_v36 }
 0x389   :  { %v1555_v42 = vpop.eup %1554 }
 0x38a   :  { %v1026_v48 = vmul.f32 %v1555_v42, %v1020_v35  ;;  %v3157_v35 = vld [vmem:[#allocation70_spill] sm:$0xff] }
 0x38c   :  { %1048 = vmatmul.f32.vlgmr.msra.gmra.mxu0 %v1026_v48  ;;  %1068 = vmatmul.f32.vlgmr.msra.gmra.mxu1 %v1026_v48 }
 0x38d   :  { %1088 = vmatmul.f32.vlgmr.msra.gmra.mxu2 %v1026_v48  ;;  %1108 = vmatmul.f32.vlgmr.msra.gmra.mxu3 %v1026_v48  ;;  %v3158_v48 = vld [vmem:[#allocation71_spill] sm:$0xff] }
 0x38e   :  { %1246 = vmatpush.msra.mxu0 %v2522_v58  ;;  %1266 = vmatpush.msra.mxu1 %v2525_v62  ;;  %v3131_v58 = vld [vmem:[#allocation24_spill] sm:$0xff]  ;;  %v3132_v62 = vld [vmem:[#allocation25_spill] sm:$0xff] }
 0x38f   :  { %1286 = vmatpush.msra.mxu2 %v2528_v47  ;;  %1306 = vmatpush.msra.mxu3 %v2531_v45  ;;  %v3133_v47 = vld [vmem:[#allocation27_spill] sm:$0xff]  ;;  %v3134_v45 = vld [vmem:[#allocation26_spill] sm:$0xff] }
 0x390   :  { %1247 = vmatpush.msra.mxu0 %v2534_v52  ;;  %1267 = vmatpush.msra.mxu1 %v2537_v54  ;;  %v3135_v52 = vld [vmem:[#allocation48_spill] sm:$0xff]  ;;  %v3136_v54 = vld [vmem:[#allocation49_spill] sm:$0xff] }
 0x391   :  { %1287 = vmatpush.msra.mxu2 %v2540_v61  ;;  %1307 = vmatpush.msra.mxu3 %v2543_v51  ;;  %v3137_v61 = vld [vmem:[#allocation50_spill] sm:$0xff]  ;;  %v3138_v51 = vld [vmem:[#allocation51_spill] sm:$0xff] }
 0x392   :  { %1248 = vmatpush.msra.mxu0 %v2546_v39  ;;  %1268 = vmatpush.msra.mxu1 %v2549_v44  ;;  %v3139_v39 = vld [vmem:[#allocation28_spill] sm:$0xff]  ;;  %v3140_v44 = vld [vmem:[#allocation29_spill] sm:$0xff] }
 0x393   :  { %1288 = vmatpush.msra.mxu2 %v2552_v56  ;;  %1308 = vmatpush.msra.mxu3 %v2555_v26  ;;  %v3141_v56 = vld [vmem:[#allocation31_spill] sm:$0xff]  ;;  %v3142_v26 = vld [vmem:[#allocation30_spill] sm:$0xff] }
 0x394   :  { %1249 = vmatpush.msra.mxu0 %v2558_v57  ;;  %1269 = vmatpush.msra.mxu1 %v2561_v53  ;;  %v3143_v57 = vld [vmem:[#allocation32_spill] sm:$0xff]  ;;  %v3144_v53 = vld [vmem:[#allocation33_spill] sm:$0xff] }
 0x395   :  { %1289 = vmatpush.msra.mxu2 %v2564_v1  ;;  %1309 = vmatpush.msra.mxu3 %v2567_v2  ;;  %v3145_v1 = vld [vmem:[#allocation35_spill] sm:$0xff]  ;;  %v3146_v2 = vld [vmem:[#allocation34_spill] sm:$0xff] }
 0x396   :  { %1250 = vmatpush.msra.mxu0 %v2570_v3  ;;  %1270 = vmatpush.msra.mxu1 %v2573_v4  ;;  %v3147_v3 = vld [vmem:[#allocation36_spill] sm:$0xff]  ;;  %v3148_v4 = vld [vmem:[#allocation37_spill] sm:$0xff] }
 0x397   :  { %1290 = vmatpush.msra.mxu2 %v2576_v5  ;;  %1310 = vmatpush.msra.mxu3 %v2579_v6  ;;  %v3149_v5 = vld [vmem:[#allocation39_spill] sm:$0xff]  ;;  %v3150_v6 = vld [vmem:[#allocation38_spill] sm:$0xff] }
 0x398   :  { %1251 = vmatpush.msra.mxu0 %v2582_v7  ;;  %1271 = vmatpush.msra.mxu1 %v2585_v8 }
 0x399   :  { %1291 = vmatpush.msra.mxu2 %v2588_v9  ;;  %1311 = vmatpush.msra.mxu3 %v2591_v10  ;;  %v3151_v9 = vld [vmem:[#allocation64_spill] sm:$0xff] }
 0x39a   :  { %1252 = vmatpush.msra.mxu0 %v2594_v11  ;;  %1272 = vmatpush.msra.mxu1 %v2597_v12  ;;  %v3152_v11 = vld [vmem:[#allocation65_spill] sm:$0xff] }
 0x39b   :  { %1292 = vmatpush.msra.mxu2 %v2600_v14  ;;  %1312 = vmatpush.msra.mxu3 %v2603_v15 }
 0x39c   :  { %1253 = vmatpush.msra.mxu0 %v2606_v16  ;;  %1273 = vmatpush.msra.mxu1 %v2609_v17 }
 0x39d   :  { %1293 = vmatpush.msra.mxu2 %v2612_v18  ;;  %1313 = vmatpush.msra.mxu3 %v2615_v19  ;;  %v3153_v18 = vld [vmem:[#allocation66_spill] sm:$0xff] }
 0x39e   :  { %1254 = vmatpush.msra.mxu0 %v2618_v20  ;;  %1274 = vmatpush.msra.mxu1 %v2621_v21  ;;  %v3154_v20 = vld [vmem:[#allocation67_spill] sm:$0xff] }
 0x39f   :  { %1294 = vmatpush.msra.mxu2 %v2624_v22  ;;  %1314 = vmatpush.msra.mxu3 %v2627_v23 }
 0x3a0   :  { %1255 = vmatpush.msra.mxu0 %v2630_v24  ;;  %1275 = vmatpush.msra.mxu1 %v2633_v25 }
 0x3a1   :  { %1295 = vmatpush.msra.mxu2 %v2636_v27  ;;  %1315 = vmatpush.msra.mxu3 %v2639_v28 }
 0x3a2   :  { %1256 = vmatpush.msra.mxu0 %v2642_v29  ;;  %1276 = vmatpush.msra.mxu1 %v2645_v30 }
 0x3a3   :  { %1296 = vmatpush.msra.mxu2 %v2648_v31  ;;  %1316 = vmatpush.msra.mxu3 %v2651_v32 }
 0x3a4   :  { %1257 = vmatpush.msra.mxu0 %v3131_v58  ;;  %1277 = vmatpush.msra.mxu1 %v3132_v62 }
 0x3a5   :  { %1297 = vmatpush.msra.mxu2 %v3133_v47  ;;  %1317 = vmatpush.msra.mxu3 %v3134_v45 }
 0x3a6   :  { %1258 = vmatpush.msra.mxu0 %v3135_v52  ;;  %1278 = vmatpush.msra.mxu1 %v3136_v54 }
 0x3a7   :  { %1298 = vmatpush.msra.mxu2 %v3137_v61  ;;  %1318 = vmatpush.msra.mxu3 %v3138_v51 }
 0x3a8   :  { %1259 = vmatpush.msra.mxu0 %v3139_v39  ;;  %1279 = vmatpush.msra.mxu1 %v3140_v44 }
 0x3a9   :  { %1299 = vmatpush.msra.mxu2 %v3141_v56  ;;  %1319 = vmatpush.msra.mxu3 %v3142_v26 }
 0x3aa   :  { %1260 = vmatpush.msra.mxu0 %v3143_v57  ;;  %1280 = vmatpush.msra.mxu1 %v3144_v53 }
 0x3ab   :  { %1300 = vmatpush.msra.mxu2 %v3145_v1  ;;  %1320 = vmatpush.msra.mxu3 %v3146_v2 }
 0x3ac   :  { %1261 = vmatpush.msra.mxu0 %v3147_v3  ;;  %1281 = vmatpush.msra.mxu1 %v3148_v4  ;;  %v1367_v4 = vld [vmem:[#allocation11 + $0x70] sm:$0xff] }
 0x3ad   :  { %1301 = vmatpush.msra.mxu2 %v3149_v5  ;;  %1321 = vmatpush.msra.mxu3 %v3150_v6  ;;  %v1366_v5 = vld [vmem:[#allocation11 + $0x68] sm:$0xff]  ;;  %v1365_v6 = vld [vmem:[#allocation11 + $0x60] sm:$0xff] }
 0x409   :  { %v1049_v7 = vpop.f32.mrf.mxu0  ;;  %v1069_v8 = vpop.f32.mrf.mxu1 }
 0x40a   :  { %v1112_v10 = vadd.f32 %v1049_v7, %v3151_v9  ;;  %v1113_v12 = vadd.f32 %v1069_v8, %v3152_v11  ;;  %v1364_v7 = vld [vmem:[#allocation11 + $0x58] sm:$0xff]  ;;  %v1363_v8 = vld [vmem:[#allocation11 + $0x50] sm:$0xff]  ;;  %v1362_v9 = vld [vmem:[#allocation11 + $0x48] sm:$0xff] }
 0x40b   :  { %v1360_v11 = vld [vmem:[#allocation11 + $0x38] sm:$0xff] }
 0x40c   :  { %v1116_v14 = vmul.f32 0.5, %v1112_v10  ;;  %v1117_v15 = vmul.f32 0.5, %v1113_v12  ;;  %v1361_v10 = vld [vmem:[#allocation11 + $0x40] sm:$0xff]  ;;  %v1359_v12 = vld [vmem:[#allocation11 + $0x30] sm:$0xff] }
 0x40e   :  { %1556 = vtanh.f32 %v1116_v14  ;;  %v1358_v14 = vld [vmem:[#allocation11 + $0x28] sm:$0xff] }
 0x40f   :  { %1558 = vtanh.f32 %v1117_v15  ;;  %v1357_v15 = vld [vmem:[#allocation11 + $0x20] sm:$0xff] }
 0x410   :  { %v1089_v16 = vpop.f32.mrf.mxu2  ;;  %v1109_v17 = vpop.f32.mrf.mxu3 }
 0x411   :  { %v1114_v19 = vadd.f32 %v1089_v16, %v3153_v18  ;;  %v1115_v21 = vadd.f32 %v1109_v17, %v3154_v20  ;;  %v1373_v16 = vld [vmem:[#allocation12 + $0x18] sm:$0xff]  ;;  %v1372_v18 = vld [vmem:[#allocation12 + $0x10] sm:$0xff]  ;;  %v1371_v20 = vld [vmem:[#allocation12 + $0x8] sm:$0xff] }
 0x412   :  { %v1356_v17 = vld [vmem:[#allocation11 + $0x18] sm:$0xff] }
 0x413   :  { %v1118_v22 = vmul.f32 0.5, %v1114_v19  ;;  %1560 = vtanh.f32 %v1115_v21  ;;  %v1355_v19 = vld [vmem:[#allocation11 + $0x10] sm:$0xff]  ;;  %v1354_v21 = vld [vmem:[#allocation11 + $0x8] sm:$0xff] }
 0x414   :  { %v1557_v23 = vpop.eup %1556 }
 0x415   :  { %v1559_v24 = vpop.eup %1558  ;;  %v1122_v25 = vmul.f32 0.5, %v1557_v23  ;;  %1562 = vtanh.f32 %v1118_v22  ;;  %v1370_v22 = vld [vmem:[#allocation12] sm:$0xff] }
 0x416   :  { %v1123_v27 = vmul.f32 0.5, %v1559_v24  ;;  %v1353_v23 = vld [vmem:[#allocation11] sm:$0xff]  ;;  %v1369_v24 = vld [vmem:[#allocation6] sm:$0xff] }
 0x417   :  { %v1125_v28 = vadd.f32 0.5, %v1122_v25  ;;  %v1436_v25 = vld [vmem:[#allocation14 + $0x78] sm:$0xff] }
 0x418   :  { %v1126_v29 = vadd.f32 0.5, %v1123_v27  ;;  %v1435_v27 = vld [vmem:[#allocation14 + $0x70] sm:$0xff] }
 0x419   :  { %v1561_v30 = vpop.eup %1560 }
 0x41a   :  { %v1129_v31 = vmul.f32 %v1126_v29, %v2791_v43  ;;  %v1130_v32 = vmul.f32 %v1561_v30, %v1125_v28  ;;  %v1434_v30 = vld [vmem:[#allocation14 + $0x68] sm:$0xff] }
 0x41b   :  { %v1563_v13 = vpop.eup %1562 }
 0x41c   :  { %v1131_v60 = vadd.f32 %v1130_v32, %v1129_v31  ;;  %v1124_v33 = vmul.f32 0.5, %v1563_v13  ;;  %v3159_v31 = vld [vmem:[#allocation72_spill] sm:$0xff]  ;;  %v3160_v13 = vld [vmem:[#allocation73_spill] sm:$0xff] }
 0x41e   :  { %1564 = vtanh.f32 %v1131_v60  ;;  %v1127_v34 = vadd.f32 0.5, %v1124_v33  ;;  %v1433_v33 = vld [vmem:[#allocation14 + $0x60] sm:$0xff] }
 0x424   :  { %v1565_v50 = vpop.eup %1564 }
 0x425   :  { %v1133_v40 = vmul.f32 %v1565_v50, %v1127_v34 }
 0x427   :  { %1155 = vmatmul.f32.vlgmr.msrb.gmra.mxu0 %v1133_v40  ;;  %1175 = vmatmul.f32.vlgmr.msrb.gmra.mxu1 %v1133_v40 }
 0x428   :  { %1195 = vmatmul.f32.vlgmr.msrb.gmra.mxu2 %v1133_v40  ;;  %1215 = vmatmul.f32.vlgmr.msrb.gmra.mxu3 %v1133_v40  ;;  %v1432_v40 = vld [vmem:[#allocation14 + $0x58] sm:$0xff] }
 0x429   :  { %1398 = vmatpush.msrb.mxu1 %v1368_v37  ;;  %1390 = vmatpush.msrb.mxu0 %v1373_v16  ;;  %v1431_v37 = vld [vmem:[#allocation14 + $0x50] sm:$0xff]  ;;  %v1504_v16 = vld [vmem:[#allocation15 + $0x5] ss:$0 sm:$0xff] }
 0x42a   :  { %1438 = vmatpush.msrb.mxu2 %v1436_v25 }
 0x42b   :  { %1399 = vmatpush.msrb.mxu1 %v1367_v4  ;;  %1391 = vmatpush.msrb.mxu0 %v1372_v18  ;;  %v1423_v4 = vld [vmem:[#allocation14 + $0x10] sm:$0xff] }
 0x42c   :  { %1439 = vmatpush.msrb.mxu2 %v1435_v27 }
 0x42d   :  { %1400 = vmatpush.msrb.mxu1 %v1366_v5  ;;  %1392 = vmatpush.msrb.mxu0 %v1371_v20  ;;  %v1422_v5 = vld [vmem:[#allocation14 + $0x8] sm:$0xff] }
 0x42e   :  { %1440 = vmatpush.msrb.mxu2 %v1434_v30 }
 0x42f   :  { %1401 = vmatpush.msrb.mxu1 %v1365_v6  ;;  %1393 = vmatpush.msrb.mxu0 %v1370_v22 }
 0x430   :  { %1441 = vmatpush.msrb.mxu2 %v1433_v33 }
 0x431   :  { %1402 = vmatpush.msrb.mxu1 %v1364_v7  ;;  %v1502_v7 = vld [vmem:[#allocation15 + $0x1] ss:$0 sm:$0xff] }
 0x432   :  { %1442 = vmatpush.msrb.mxu2 %v1432_v40 }
 0x433   :  { %1403 = vmatpush.msrb.mxu1 %v1363_v8 }
 0x434   :  { %1443 = vmatpush.msrb.mxu2 %v1431_v37 }
 0x435   :  { %1404 = vmatpush.msrb.mxu1 %v1362_v9 }
 0x437   :  { %1405 = vmatpush.msrb.mxu1 %v1361_v10 }
 0x439   :  { %1406 = vmatpush.msrb.mxu1 %v1360_v11 }
 0x43b   :  { %1407 = vmatpush.msrb.mxu1 %v1359_v12  ;;  %v1503_v12 = vld [vmem:[#allocation15 + $0x3] ss:$0 sm:$0xff] }
 0x43d   :  { %1408 = vmatpush.msrb.mxu1 %v1358_v14 }
 0x43f   :  { %1409 = vmatpush.msrb.mxu1 %v1357_v15 }
 0x441   :  { %1410 = vmatpush.msrb.mxu1 %v1356_v17 }
 0x443   :  { %1411 = vmatpush.msrb.mxu1 %v1355_v19  ;;  %v1505_v19 = vld [vmem:[#allocation15 + $0x7] ss:$0 sm:$0xff] }
 0x445   :  { %1412 = vmatpush.msrb.mxu1 %v1354_v21 }
 0x447   :  { %1413 = vmatpush.msrb.mxu1 %v1353_v23 }
 0x4a4   :  { %v1156_v38 = vpop.f32.mrf.mxu0  ;;  %v1176_v41 = vpop.f32.mrf.mxu1 }
 0x4a5   :  { %v1219_v63 = vadd.f32 %v1156_v38, %v3155_v46  ;;  %v1220_v59 = vadd.f32 %v1176_v41, %v3156_v49  ;;  %v3161_v46 = vld [vmem:[#allocation74_spill] sm:$0xff]  ;;  %v3162_v49 = vld [vmem:[#allocation75_spill] sm:$0xff] }
 0x4a7   :  { %v1223_v55 = vmul.f32 0.5, %v1219_v63  ;;  %v1224_v0 = vmul.f32 0.5, %v1220_v59 }
 0x4a9   :  { %1566 = vtanh.f32 %v1223_v55  ;;  %v1430_v55 = vld [vmem:[#allocation14 + $0x48] sm:$0xff] }
 0x4aa   :  { %1568 = vtanh.f32 %v1224_v0  ;;  %1444 = vmatpush.msrb.mxu2 %v1430_v55 }
 0x4ab   :  { %v1196_v43 = vpop.f32.mrf.mxu2  ;;  %v1216_v36 = vpop.f32.mrf.mxu3 }
 0x4ac   :  { %v1221_v42 = vadd.f32 %v1196_v43, %v3157_v35  ;;  %v1222_v58 = vadd.f32 %v1216_v36, %v3158_v48  ;;  %v1429_v43 = vld [vmem:[#allocation14 + $0x40] sm:$0xff]  ;;  %v1428_v48 = vld [vmem:[#allocation14 + $0x38] sm:$0xff] }
 0x4ad   :  { %1445 = vmatpush.msrb.mxu2 %v1429_v43 }
 0x4ae   :  { %v1225_v62 = vmul.f32 0.5, %v1221_v42  ;;  %1570 = vtanh.f32 %v1222_v58 }
 0x4af   :  { %v1567_v47 = vpop.eup %1566  ;;  %1446 = vmatpush.msrb.mxu2 %v1428_v48 }
 0x4b0   :  { %v1569_v45 = vpop.eup %1568  ;;  %v1229_v52 = vmul.f32 0.5, %v1567_v47  ;;  %1572 = vtanh.f32 %v1225_v62  ;;  %v1427_v47 = vld [vmem:[#allocation14 + $0x30] sm:$0xff] }
 0x4b1   :  { %v1230_v54 = vmul.f32 0.5, %v1569_v45  ;;  %1447 = vmatpush.msrb.mxu2 %v1427_v47 }
 0x4b2   :  { %v1232_v61 = vadd.f32 0.5, %v1229_v52 }
 0x4b3   :  { %v1233_v51 = vadd.f32 0.5, %v1230_v54  ;;  %v1426_v54 = vld [vmem:[#allocation14 + $0x28] sm:$0xff] }
 0x4b4   :  { %v1571_v39 = vpop.eup %1570  ;;  %1448 = vmatpush.msrb.mxu2 %v1426_v54 }
 0x4b5   :  { %v1236_v44 = vmul.f32 %v1233_v51, %v1131_v60  ;;  %v1237_v56 = vmul.f32 %v1571_v39, %v1232_v61  ;;  %v1425_v39 = vld [vmem:[#allocation14 + $0x20] sm:$0xff] }
 0x4b6   :  { %v1573_v26 = vpop.eup %1572  ;;  %1449 = vmatpush.msrb.mxu2 %v1425_v39 }
 0x4b7   :  { %v2867_v57 = vadd.f32 %v1237_v56, %v1236_v44  ;;  %v1231_v53 = vmul.f32 0.5, %v1573_v26 }
 0x4b9   :  { %1574 = vtanh.f32 %v2867_v57  ;;  %v1234_v1 = vadd.f32 0.5, %v1231_v53 }
 0x4bf   :  { %v1575_v2 = vpop.eup %1574 }
 0x4c0   :  { %v1240_v3 = vmul.f32 %v1575_v2, %v1234_v1 }
 0x4c2   :  { %1262 = vmatmul.f32.vlgmr.msra.gmra.mxu0 %v1240_v3  ;;  %1282 = vmatmul.f32.vlgmr.msra.gmra.mxu1 %v1240_v3 }
 0x4c3   :  { %1302 = vmatmul.f32.vlgmr.msra.gmra.mxu2 %v1240_v3  ;;  %1322 = vmatmul.f32.vlgmr.msra.gmra.mxu3 %v1240_v3  ;;  %v1424_v3 = vld [vmem:[#allocation14 + $0x18] sm:$0xff] }
 0x4c4   :  { %1450 = vmatpush.msrb.mxu2 %v1424_v3 }
 0x4c6   :  { %1451 = vmatpush.msrb.mxu2 %v1423_v4 }
 0x4c8   :  { %1452 = vmatpush.msrb.mxu2 %v1422_v5 }
 0x4ca   :  { %1487 = vmatmul.msk.f32.vlgmr.msrb.gmra.mxu0 %vm1374_vm0, %v1369_v24 }
 0x53f   :  { %v1263_v28 = vpop.f32.mrf.mxu0  ;;  %v1283_v29 = vpop.f32.mrf.mxu1 }
 0x540   :  { %v1326_v32 = vadd.f32 %v1263_v28, %v3159_v31  ;;  %v1327_v60 = vadd.f32 %v1283_v29, %v3160_v13 }
 0x542   :  { %v1330_v34 = vmul.f32 0.5, %v1326_v32  ;;  %v1331_v50 = vmul.f32 0.5, %v1327_v60 }
 0x544   :  { %1576 = vtanh.f32 %v1330_v34 }
 0x545   :  { %1578 = vtanh.f32 %v1331_v50 }
 0x546   :  { %v1303_v38 = vpop.f32.mrf.mxu2  ;;  %v1323_v41 = vpop.f32.mrf.mxu3 }
 0x547   :  { %v1328_v63 = vadd.f32 %v1303_v38, %v3161_v46  ;;  %v1329_v59 = vadd.f32 %v1323_v41, %v3162_v49  ;;  %v1395_v6 = vpop.f32.mrf.mxu0 }
 0x549   :  { %v1332_v0 = vmul.f32 0.5, %v1328_v63  ;;  %1580 = vtanh.f32 %v1329_v59 }
 0x54a   :  { %v1577_v36 = vpop.eup %1576 }
 0x54b   :  { %v1579_v35 = vpop.eup %1578  ;;  %v1336_v42 = vmul.f32 0.5, %v1577_v36  ;;  %1582 = vtanh.f32 %v1332_v0 }
 0x54c   :  { %v1337_v58 = vmul.f32 0.5, %v1579_v35 }
 0x54d   :  { %v1339_v62 = vadd.f32 0.5, %v1336_v42 }
 0x54e   :  { %v1340_v45 = vadd.f32 0.5, %v1337_v58 }
 0x54f   :  { %v1581_v52 = vpop.eup %1580 }
 0x550   :  { %v1343_v61 = vmul.f32 %v1340_v45, %v2867_v57  ;;  %v1344_v51 = vmul.f32 %v1581_v52, %v1339_v62  ;;  %v1421_v57 = vld [vmem:[#allocation14] sm:$0xff] }
 0x551   :  { %v1583_v44 = vpop.eup %1582  ;;  %1453 = vmatpush.msrb.mxu2 %v1421_v57 }
 0x552   :  { %v1345_v56 = vadd.f32 %v1344_v51, %v1343_v61  ;;  %v1338_v26 = vmul.f32 0.5, %v1583_v44 }
 0x554   :  { %1584 = vtanh.f32 %v1345_v56  ;;  %v1341_v53 = vadd.f32 0.5, %v1338_v26 }
 0x55a   :  { %v1585_v1 = vpop.eup %1584 }
 0x55b   :  { %v1347_v2 = vmul.f32 %v1585_v1, %v1341_v53 }
 0x55d   :  { %1414 = vmatmul.f32.vlgmr.msrb.gmra.mxu1 %v1347_v2  ;;  %1348 = vst [vmem:[#allocation17] sm:$0xff] %v1347_v2 }
 0x5da   :  { %v1415_v8 = vpop.f32.mrf.mxu1 }
 0x5db   :  { %v1416_v9 = vadd.f32 %v1415_v8, %v1395_v6 }
 0x5dd   :  { %v1419_v10 = vadd.f32 %v1502_v7, %v1416_v9 }
 0x5df   :  { %v1420_v11 = vmax.f32 %v1419_v10, 0.0 }
 0x5e1   :  { %1454 = vmatmul.f32.vlgmr.msrb.gmra.mxu2 %v1420_v11 }
 0x664   :  { %v1455_v14 = vpop.f32.mrf.mxu2 }
 0x665   :  { %v1456_v15 = vadd.f32 %v1503_v12, %v1455_v14 }
 0x667   :  { %v1458_v17 = vmax.f32 %v1456_v15, 0.0 }
 0x669   :  { %v1460_v18 = vmul.f32 %v1504_v16, %v1458_v17 }
 0x66b   :  { %1461 = vadd.xlane.f32.xlu0 %v1460_v18 }
 0x6de   :  { %v1462_v20 = vpop.xlane.xlu0 %1461 }
 0x6df   :  { %v1464_v21 = vadd.f32 %v1505_v19, %v1462_v20 }
 0x6e1   :  { %1465 = vst [vmem:[#allocation17 + $0x8] sm:$0xff] %v1464_v21 }
 0x6e2   :  { %1476 = dma.vmem_to_hbm [thread:$0]  %s1472_s16, 256, %s1474_s22, [#allocation5]  }
 0x6e3   :  { %1876 = dma.done.wait [#allocation5], 256  }
 0x6e4   :  { %1877 = vsyncadd [#allocation5], 4294967040 }
 0x6e5   :  { %1481 = vsyncpa [#allocation4], 1 }
 0x6e6   :  { %1482 = vsyncpa [#allocation7], 1 }
 0x6e7   :  { %1483 = vsyncpa [#allocation10], 1 }
 0x6e8   :  { %1484 = vsyncpa [#allocation13], 1 }
 0x6e9   :  { %1485 = vsyncpa [#allocation16], 1 }
 0x6ea   :  { %1486 = vsyncpa [#allocation5], 1 }

</bundles_post_ra>
